<compile_context>
chip_gen: v7x
topology: tpu7x:2x2x1
jax: 0.10.0
libtpu: 0.0.40
codegen_flags: <defaults>
</compile_context>

<pallas_src>
import functools

import jax
import jax.numpy as jnp
from jax.experimental import pallas as pl
from jax.experimental.pallas import tpu as pltpu

EPS = 1e-5
LANE = 128


def _round_up(x, m):
    return (x + m - 1) // m * m


def _row_tile(ho, wo):
    """Largest divisor of `ho` keeping the per-step M-tile (rows*wo) modest."""
    for cand in range(ho, 0, -1):
        if ho % cand == 0 and cand * wo <= 512:
            return cand
    return 1


def _phase_stack(x, stride):
    """Decompose (N, Hp, Wp, C) into stride^2 phase images stacked along rows.

    Result y satisfies  y[n, p*hq + i, j, :] = x[n, i*stride + p//stride,
    j*stride + p%stride, :]  (zero padded at the far edge).  Volume-preserving
    (this replaces a 9x im2col HBM buffer).
    """
    n, hp, wp, c = x.shape
    s = stride
    if s == 1:
        return x, hp, wp
    hq = -(-hp // s)
    wq = -(-wp // s)
    xp = jnp.pad(x, ((0, 0), (0, hq * s - hp), (0, wq * s - wp), (0, 0)))
    xr = xp.reshape(n, hq, s, wq, s, c)
    ph = jnp.transpose(xr, (0, 2, 4, 1, 3, 5))          # (n, s, s, hq, wq, c)
    return ph.reshape(n, s * s * hq, wq, c), hq, wq


def _conv_taps(ksize, stride, hq):
    """Static per-tap (row_base, col_offset) into the phase-stacked input."""
    taps = []
    for kh in range(ksize):
        for kw in range(ksize):
            p = (kh % stride) * stride + (kw % stride)
            taps.append((p * hq + kh // stride, kw // stride))
    return tuple(taps)


def _center_tap(stride, hq):
    """1x1 stride-s conv on the *unpadded* input == the (kh=1, kw=1) tap of the
    padded phase stack, so the shortcut reuses the conv1 input."""
    p = (1 % stride) * stride + (1 % stride)
    return ((p * hq + 1 // stride, 1 // stride),)


# ----------------------------------------------------------------------------
# Pallas kernels
# ----------------------------------------------------------------------------
def _conv_stats_kernel(ph_ref, w_ref, y_ref, st_ref, slab_ref, *, taps, tr, cin_p):
    """One (image, row-tile, cout-tile) step: long-K conv + BN stat partials.

    ph_ref   : (1, P*Hq, Wq, Cin_p)        bf16  phase-stacked image (resident)
    w_ref    : (n_taps*Cin_p, TCO)         bf16  packed weights (resident)
    y_ref    : (1, TR, Wo, TCO)            bf16  conv output tile
    st_ref   : (1, 1, 2, TCO)              f32   per-tile [sum; sum_sq]
    slab_ref : (TR, Wo, n_taps*Cin_p)      bf16  VMEM scratch (K-slab)
    """
    r = pl.program_id(1)
    _, _, wo, tco = y_ref.shape
    row0 = pl.multiple_of(r * tr, tr)

    # Build the K-slab: each tap's window lands at a lane-aligned K offset.
    for t, (row_base, dc) in enumerate(taps):
        slab_ref[:, :, pl.ds(t * cin_p, cin_p)] = (
            ph_ref[0, pl.ds(row_base + row0, tr), pl.ds(dc, wo), :])

    k_tot = len(taps) * cin_p
    acc = jnp.dot(slab_ref[...].reshape(tr * wo, k_tot), w_ref[...],
                  preferred_element_type=jnp.float32)       # (M, TCO) f32

    y_ref[...] = acc.reshape(1, tr, wo, tco).astype(y_ref.dtype)
    s = jnp.sum(acc, axis=0, keepdims=True)
    sq = jnp.sum(acc * acc, axis=0, keepdims=True)
    st_ref[0, 0, :, :] = jnp.concatenate([s, sq], axis=0)    # single store


def _bn1_relu_pad_kernel(y_ref, sc_ref, sh_ref, o_ref):
    """Normalize + ReLU one image and write it into a halo-padded output."""
    sc = sc_ref[...].reshape(1, 1, -1)
    sh = sh_ref[...].reshape(1, 1, -1)
    ho, wo = y_ref.shape[1], y_ref.shape[2]
    out = jnp.maximum(y_ref[0].astype(jnp.float32) * sc + sh, 0.0)
    o_ref[...] = jnp.zeros_like(o_ref)                        # zero halo
    o_ref[0, pl.ds(1, ho), pl.ds(1, wo), :] = out.astype(o_ref.dtype)


def _bn2_residual_relu_kernel(y_ref, sc_ref, sh_ref, r_ref, rsc_ref, rsh_ref,
                              o_ref):
    sc = sc_ref[...].reshape(1, 1, 1, -1)
    sh = sh_ref[...].reshape(1, 1, 1, -1)
    rsc = rsc_ref[...].reshape(1, 1, 1, -1)
    rsh = rsh_ref[...].reshape(1, 1, 1, -1)
    out = y_ref[...].astype(jnp.float32) * sc + sh
    res = r_ref[...].astype(jnp.float32) * rsc + rsh
    o_ref[...] = jnp.maximum(out + res, 0.0).astype(o_ref.dtype)


# ----------------------------------------------------------------------------
# pallas_call wrappers
# ----------------------------------------------------------------------------
def conv_bn_stats(ph, w_packed, taps, ho, wo, tr):
    """Conv (long-K over taps) + fused per-channel [sum, sum_sq] partials."""
    n, ph_rows, wq, cin_p = ph.shape
    k_tot, cout_p = w_packed.shape
    n_taps = len(taps)
    assert k_tot == n_taps * cin_p
    num_r = ho // tr
    tco = 256 if cout_p % 256 == 0 else LANE                 # lane-dense tile
    num_co = cout_p // tco

    kernel = functools.partial(_conv_stats_kernel, taps=taps, tr=tr, cin_p=cin_p)
    y, stats = pl.pallas_call(
        kernel,
        out_shape=(jax.ShapeDtypeStruct((n, ho, wo, cout_p), jnp.bfloat16),
                   jax.ShapeDtypeStruct((n, num_r, 2, cout_p), jnp.float32)),
        grid=(n, num_r, num_co),
        in_specs=[
            pl.BlockSpec((1, ph_rows, wq, cin_p), lambda b, r, c: (b, 0, 0, 0)),
            pl.BlockSpec((k_tot, tco), lambda b, r, c: (0, c)),
        ],
        out_specs=(
            pl.BlockSpec((1, tr, wo, tco), lambda b, r, c: (b, r, 0, c)),
            pl.BlockSpec((1, 1, 2, tco), lambda b, r, c: (b, r, 0, c)),
        ),
        scratch_shapes=[pltpu.VMEM((tr, wo, n_taps * cin_p), jnp.bfloat16)],
        compiler_params=pltpu.CompilerParams(
            dimension_semantics=("parallel", "parallel", "parallel"),
            vmem_limit_bytes=48 * 1024 * 1024),
    )(ph, w_packed)
    return y, stats


def _fold_bn(stats, gamma_p, beta_p, count):
    """Fold partial [sum, sum_sq] + gamma/beta into per-channel scale/shift."""
    s = jnp.sum(stats[:, :, 0, :], axis=(0, 1))
    sq = jnp.sum(stats[:, :, 1, :], axis=(0, 1))
    mean = s / count
    var = jnp.maximum(sq / count - mean * mean, 0.0)          # biased batch var
    scale = gamma_p[0] * jax.lax.rsqrt(var + EPS)
    shift = beta_p[0] - mean * scale
    return scale.reshape(1, -1), shift.reshape(1, -1)


def bn1_relu_pad(y, scale, shift):
    """BN1 + ReLU, written directly into a halo-padded (ho+2, wo+2) bf16 buffer."""
    n, ho, wo, cp = y.shape
    return pl.pallas_call(
        _bn1_relu_pad_kernel,
        out_shape=jax.ShapeDtypeStruct((n, ho + 2, wo + 2, cp), jnp.bfloat16),
        grid=(n,),
        in_specs=[pl.BlockSpec((1, ho, wo, cp), lambda b: (b, 0, 0, 0)),
                  pl.BlockSpec((1, cp), lambda b: (0, 0)),
                  pl.BlockSpec((1, cp), lambda b: (0, 0))],
        out_specs=pl.BlockSpec((1, ho + 2, wo + 2, cp), lambda b: (b, 0, 0, 0)),
        compiler_params=pltpu.CompilerParams(dimension_semantics=("parallel",)),
    )(y, scale, shift)


def bn2_residual_relu(y, scale, shift, residual, res_scale, res_shift, *,
                      out_dtype):
    """BN2 + shortcut-BN + residual add + ReLU; whole-image blocks."""
    n, ho, wo, cp = y.shape
    act_spec = pl.BlockSpec((1, ho, wo, cp), lambda b: (b, 0, 0, 0))
    vec_spec = pl.BlockSpec((1, cp), lambda b: (0, 0))
    return pl.pallas_call(
        _bn2_residual_relu_kernel,
        out_shape=jax.ShapeDtypeStruct((n, ho, wo, cp), out_dtype),
        grid=(n,),
        in_specs=[act_spec, vec_spec, vec_spec, act_spec, vec_spec, vec_spec],
        out_specs=act_spec,
        compiler_params=pltpu.CompilerParams(dimension_semantics=("parallel",)),
    )(y, scale, shift, residual, res_scale, res_shift)


# ----------------------------------------------------------------------------
# Parameter packing (hoisted out of the forward pass) and forward
# ----------------------------------------------------------------------------
def prepare_params(params):
    """Pack PyTorch-layout params once: conv weights -> (taps*Cin_p, Cout_p)
    bf16 (K-major, matching the in-kernel slab), BN gamma/beta -> (1, Cout_p)
    f32 (channels zero-padded to 128)."""
    planes, in_planes = params["w1"].shape[0], params["w1"].shape[1]
    cin_p = _round_up(in_planes, LANE)
    cout_p = _round_up(planes, LANE)

    def pack_conv(w, cin_pad):
        cout, cin, kh, kw = w.shape
        t = jnp.transpose(w, (2, 3, 1, 0))                    # (kh, kw, cin, cout)
        t = jnp.pad(t, ((0, 0), (0, 0), (0, cin_pad - cin), (0, cout_p - cout)))
        return t.reshape(kh * kw * cin_pad, cout_p).astype(jnp.bfloat16)

    def pack_vec(v):
        return jnp.pad(v.astype(jnp.float32),
                       (0, cout_p - v.shape[0])).reshape(1, cout_p)

    prep = {
        "w1": pack_conv(params["w1"], cin_p),
        "w2": pack_conv(params["w2"], cout_p),
        "g1": pack_vec(params["g1"]), "b1": pack_vec(params["b1"]),
        "g2": pack_vec(params["g2"]), "b2": pack_vec(params["b2"]),
        "meta": (in_planes, planes, cin_p, cout_p),
    }
    if "ws" in params:
        prep["ws"] = pack_conv(params["ws"], cin_p)
        prep["gs"] = pack_vec(params["gs"])
        prep["bs"] = pack_vec(params["bs"])
    return prep


def basic_block_forward(x_nchw, prep, stride):
    in_planes, planes, cin_p, cout_p = prep["meta"]
    x = jnp.transpose(x_nchw, (0, 2, 3, 1)).astype(jnp.float32)    # NCHW -> NHWC
    n, h, w, cin = x.shape
    assert cin == in_planes

    x_cp = jnp.pad(x, ((0, 0), (0, 0), (0, 0), (0, cin_p - cin)))  # channel pad
    x_pad = jnp.pad(x_cp, ((0, 0), (1, 1), (1, 1), (0, 0))).astype(jnp.bfloat16)
    ph1, hq1, _ = _phase_stack(x_pad, stride)

    ho = (h - 1) // stride + 1
    wo = (w - 1) // stride + 1
    tr = _row_tile(ho, wo)
    count = n * ho * wo

    # conv1 (3x3, stride, pad 1) with fused BN-stat partials.
    y1, st1 = conv_bn_stats(ph1, prep["w1"], _conv_taps(3, stride, hq1), ho, wo, tr)
    sc1, sh1 = _fold_bn(st1, prep["g1"], prep["b1"], count)
    # bn1 + ReLU written straight into the halo-padded buffer conv2 consumes.
    o1_pad = bn1_relu_pad(y1, sc1, sh1)

    # conv2 (3x3, stride 1, pad 1): phase stack is the identity for stride 1.
    ph2, hq2, _ = _phase_stack(o1_pad, 1)
    y2, st2 = conv_bn_stats(ph2, prep["w2"], _conv_taps(3, 1, hq2), ho, wo, tr)
    sc2, sh2 = _fold_bn(st2, prep["g2"], prep["b2"], count)

    # shortcut: 1x1 stride-s conv (single tap, reuses ph1) + BN, or identity.
    if stride != 1 or in_planes != planes:
        ys, sts = conv_bn_stats(ph1, prep["ws"], _center_tap(stride, hq1), ho, wo, tr)
        rsc, rsh = _fold_bn(sts, prep["gs"], prep["bs"], count)
        residual = ys
    else:
        residual = x_cp
        rsc = jnp.ones((1, cout_p), jnp.float32)
        rsh = jnp.zeros((1, cout_p), jnp.float32)

    # bn2 + shortcut-BN + residual add + ReLU fused in one whole-image kernel.
    out = bn2_residual_relu(y2, sc2, sh2, residual, rsc, rsh,
                            out_dtype=jnp.float32)
    # TODO(synk): when chaining blocks, keep the channel-padded NHWC bf16 layout
    # instead of slicing / transposing back to NCHW per block.
    out = out[..., :planes]
    return jnp.transpose(out, (0, 3, 1, 2))                        # NHWC -> NCHW


# ----------------------------------------------------------------------------
# Pure-JAX reference (bf16-quantized conv operands, f32 accumulation) — sanity
# ----------------------------------------------------------------------------
def reference_forward(x, params, stride):
    def conv(x, w, s, pad):
        xb = x.astype(jnp.bfloat16).astype(jnp.float32)
        wb = w.astype(jnp.bfloat16).astype(jnp.float32)
        return jax.lax.conv_general_dilated(
            xb, wb, (s, s), [(pad, pad), (pad, pad)],
            dimension_numbers=("NCHW", "OIHW", "NCHW"),
            precision=jax.lax.Precision.HIGHEST)

    def bn(y, g, b):
        mean = jnp.mean(y, axis=(0, 2, 3), keepdims=True)
        var = jnp.mean((y - mean) ** 2, axis=(0, 2, 3), keepdims=True)
        return ((y - mean) * jax.lax.rsqrt(var + EPS)
                * g.reshape(1, -1, 1, 1) + b.reshape(1, -1, 1, 1))

    planes = params["w1"].shape[0]
    out = jax.nn.relu(bn(conv(x, params["w1"], stride, 1), params["g1"], params["b1"]))
    out = bn(conv(out, params["w2"], 1, 1), params["g2"], params["b2"])
    if stride != 1 or x.shape[1] != planes:
        sc = bn(conv(x, params["ws"], stride, 0), params["gs"], params["bs"])
    else:
        sc = x
    return jax.nn.relu(out + sc)


# ----------------------------------------------------------------------------
if __name__ == "__main__":
    root = jax.random.PRNGKey(0)
    key1, key2 = jax.random.split(root)

    def make_params(key, in_planes, planes, with_shortcut):
        ks = jax.random.split(key, 10)

        def kaiming(k, shape):
            fan_in = shape[1] * shape[2] * shape[3]
            return jax.random.normal(k, shape, jnp.float32) * jnp.sqrt(2.0 / fan_in)

        p = {
            "w1": kaiming(ks[0], (planes, in_planes, 3, 3)),
            "g1": 1.0 + 0.1 * jax.random.normal(ks[1], (planes,), jnp.float32),
            "b1": 0.1 * jax.random.normal(ks[2], (planes,), jnp.float32),
            "w2": kaiming(ks[3], (planes, planes, 3, 3)),
            "g2": 1.0 + 0.1 * jax.random.normal(ks[4], (planes,), jnp.float32),
            "b2": 0.1 * jax.random.normal(ks[5], (planes,), jnp.float32),
        }
        if with_shortcut:
            p["ws"] = kaiming(ks[6], (planes, in_planes, 1, 1))
            p["gs"] = 1.0 + 0.1 * jax.random.normal(ks[7], (planes,), jnp.float32)
            p["bs"] = 0.1 * jax.random.normal(ks[8], (planes,), jnp.float32)
        return p, ks[9]

    # Tolerance covers bf16 MXU operands + bf16 intermediate conv outputs
    # (stats stay f32 inside the kernel).
    TOL = 3e-2

    # Case 1: projection shortcut (stride 2, channel change).
    N, in_planes, planes, H, W, stride = 2, 4, 8, 16, 16, 2
    params, kx = make_params(key1, in_planes, planes, True)
    x = jax.random.normal(kx, (N, in_planes, H, W), jnp.float32)    # NCHW input
    prep = prepare_params(params)                # packing hoisted out of forward
    out = jax.block_until_ready(basic_block_forward(x, prep, stride))
    assert out.shape == (N, planes, H // stride, W // stride), out.shape
    ref = reference_forward(x, params, stride)
    err = float(jnp.max(jnp.abs(out - ref)))
    assert err < TOL, f"case1 mismatch vs reference: {err}"

    # Case 2: identity shortcut (stride 1, same channels).
    params2, kx2 = make_params(key2, 8, 8, False)
    x2 = jax.random.normal(kx2, (2, 8, 16, 16), jnp.float32)
    prep2 = prepare_params(params2)
    out2 = jax.block_until_ready(basic_block_forward(x2, prep2, 1))
    assert out2.shape == (2, 8, 16, 16), out2.shape
    ref2 = reference_forward(x2, params2, 1)
    err2 = float(jnp.max(jnp.abs(out2 - ref2)))
    assert err2 < TOL, f"case2 mismatch vs reference: {err2}"

    print("KERNEL_OK")
</pallas_src>

<mosaic_0001>
module attributes {stable_mosaic.version = 11 : i64} {
  func.func @_conv_stats_kernel(%arg0: i32, %arg1: i32, %arg2: i32, %arg3: memref<1x36x9x128xbf16, #tpu.memory_space<vmem>>, %arg4: memref<1152x128xbf16, #tpu.memory_space<vmem>>, %arg5: memref<1x8x8x128xbf16, #tpu.memory_space<vmem>>, %arg6: memref<1x1x2x128xf32, #tpu.memory_space<vmem>>, %arg7: memref<8x8x1152xbf16, #tpu.memory_space<vmem>>) attributes {dimension_semantics = [#tpu.dimension_semantics<parallel>, #tpu.dimension_semantics<parallel>, #tpu.dimension_semantics<parallel>], iteration_bounds = array<i64: 2, 1, 1>, scalar_prefetch = 0 : i64, scratch_operands = 1 : i64, tpu.core_type = #tpu.core_type<tc>, window_params = [{transform_indices = @transform_0, window_bounds = array<i64: 1, 36, 9, 128>}, {transform_indices = @transform_1, window_bounds = array<i64: 1152, 128>}, {transform_indices = @transform_2, window_bounds = array<i64: 1, 8, 8, 128>}, {transform_indices = @transform_3, window_bounds = array<i64: 1, 1, 2, 128>}]} {
    %c8_i32 = arith.constant 8 : i32
    %0 = arith.muli %arg1, %c8_i32 : i32
    %1 = tpu.assume_multiple %0, 8 : i32
    %c0_i32 = arith.constant 0 : i32
    %2 = arith.addi %c0_i32, %1 : i32
    %c0 = arith.constant 0 : index
    %3 = arith.index_cast %2 : i32 to index
    %c0_0 = arith.constant 0 : index
    %c0_1 = arith.constant 0 : index
    %4 = vector.load %arg3[%c0, %3, %c0_0, %c0_1] : memref<1x36x9x128xbf16, #tpu.memory_space<vmem>>, vector<1x8x8x128xbf16>
    %5 = vector.shape_cast %4 : vector<1x8x8x128xbf16> to vector<8x8x128xbf16>
    %c0_2 = arith.constant 0 : index
    %c0_3 = arith.constant 0 : index
    %c0_4 = arith.constant 0 : index
    %6 = vector.load %arg7[%c0_2, %c0_3, %c0_4] : memref<8x8x1152xbf16, #tpu.memory_space<vmem>>, vector<8x8x128xbf16>
    tpu.vector_store %arg7[%c0_2, %c0_3, %c0_4], %5 {strides = array<i32>} : memref<8x8x1152xbf16, #tpu.memory_space<vmem>>, vector<8x8x128xbf16>,
    %c9_i32 = arith.constant 9 : i32
    %7 = arith.addi %c9_i32, %1 : i32
    %c0_5 = arith.constant 0 : index
    %8 = arith.index_cast %7 : i32 to index
    %c0_6 = arith.constant 0 : index
    %c0_7 = arith.constant 0 : index
    %9 = vector.load %arg3[%c0_5, %8, %c0_6, %c0_7] : memref<1x36x9x128xbf16, #tpu.memory_space<vmem>>, vector<1x8x8x128xbf16>
    %10 = vector.shape_cast %9 : vector<1x8x8x128xbf16> to vector<8x8x128xbf16>
    %c0_8 = arith.constant 0 : index
    %c0_9 = arith.constant 0 : index
    %c128 = arith.constant 128 : index
    %11 = vector.load %arg7[%c0_8, %c0_9, %c128] : memref<8x8x1152xbf16, #tpu.memory_space<vmem>>, vector<8x8x128xbf16>
    tpu.vector_store %arg7[%c0_8, %c0_9, %c128], %10 {strides = array<i32>} : memref<8x8x1152xbf16, #tpu.memory_space<vmem>>, vector<8x8x128xbf16>,
    %c0_i32_10 = arith.constant 0 : i32
    %12 = arith.addi %c0_i32_10, %1 : i32
    %c0_11 = arith.constant 0 : index
    %13 = arith.index_cast %12 : i32 to index
    %c1 = arith.constant 1 : index
    %c0_12 = arith.constant 0 : index
    %14 = vector.load %arg3[%c0_11, %13, %c1, %c0_12] : memref<1x36x9x128xbf16, #tpu.memory_space<vmem>>, vector<1x8x8x128xbf16>
    %15 = vector.shape_cast %14 : vector<1x8x8x128xbf16> to vector<8x8x128xbf16>
    %c0_13 = arith.constant 0 : index
    %c0_14 = arith.constant 0 : index
    %c256 = arith.constant 256 : index
    %16 = vector.load %arg7[%c0_13, %c0_14, %c256] : memref<8x8x1152xbf16, #tpu.memory_space<vmem>>, vector<8x8x128xbf16>
    tpu.vector_store %arg7[%c0_13, %c0_14, %c256], %15 {strides = array<i32>} : memref<8x8x1152xbf16, #tpu.memory_space<vmem>>, vector<8x8x128xbf16>,
    %c18_i32 = arith.constant 18 : i32
    %17 = arith.addi %c18_i32, %1 : i32
    %c0_15 = arith.constant 0 : index
    %18 = arith.index_cast %17 : i32 to index
    %c0_16 = arith.constant 0 : index
    %c0_17 = arith.constant 0 : index
    %19 = vector.load %arg3[%c0_15, %18, %c0_16, %c0_17] : memref<1x36x9x128xbf16, #tpu.memory_space<vmem>>, vector<1x8x8x128xbf16>
    %20 = vector.shape_cast %19 : vector<1x8x8x128xbf16> to vector<8x8x128xbf16>
    %c0_18 = arith.constant 0 : index
    %c0_19 = arith.constant 0 : index
    %c384 = arith.constant 384 : index
    %21 = vector.load %arg7[%c0_18, %c0_19, %c384] : memref<8x8x1152xbf16, #tpu.memory_space<vmem>>, vector<8x8x128xbf16>
    tpu.vector_store %arg7[%c0_18, %c0_19, %c384], %20 {strides = array<i32>} : memref<8x8x1152xbf16, #tpu.memory_space<vmem>>, vector<8x8x128xbf16>,
    %c27_i32 = arith.constant 27 : i32
    %22 = arith.addi %c27_i32, %1 : i32
    %c0_20 = arith.constant 0 : index
    %23 = arith.index_cast %22 : i32 to index
    %c0_21 = arith.constant 0 : index
    %c0_22 = arith.constant 0 : index
    %24 = vector.load %arg3[%c0_20, %23, %c0_21, %c0_22] : memref<1x36x9x128xbf16, #tpu.memory_space<vmem>>, vector<1x8x8x128xbf16>
    %25 = vector.shape_cast %24 : vector<1x8x8x128xbf16> to vector<8x8x128xbf16>
    %c0_23 = arith.constant 0 : index
    %c0_24 = arith.constant 0 : index
    %c512 = arith.constant 512 : index
    %26 = vector.load %arg7[%c0_23, %c0_24, %c512] : memref<8x8x1152xbf16, #tpu.memory_space<vmem>>, vector<8x8x128xbf16>
    tpu.vector_store %arg7[%c0_23, %c0_24, %c512], %25 {strides = array<i32>} : memref<8x8x1152xbf16, #tpu.memory_space<vmem>>, vector<8x8x128xbf16>,
    %c18_i32_25 = arith.constant 18 : i32
    %27 = arith.addi %c18_i32_25, %1 : i32
    %c0_26 = arith.constant 0 : index
    %28 = arith.index_cast %27 : i32 to index
    %c1_27 = arith.constant 1 : index
    %c0_28 = arith.constant 0 : index
    %29 = vector.load %arg3[%c0_26, %28, %c1_27, %c0_28] : memref<1x36x9x128xbf16, #tpu.memory_space<vmem>>, vector<1x8x8x128xbf16>
    %30 = vector.shape_cast %29 : vector<1x8x8x128xbf16> to vector<8x8x128xbf16>
    %c0_29 = arith.constant 0 : index
    %c0_30 = arith.constant 0 : index
    %c640 = arith.constant 640 : index
    %31 = vector.load %arg7[%c0_29, %c0_30, %c640] : memref<8x8x1152xbf16, #tpu.memory_space<vmem>>, vector<8x8x128xbf16>
    tpu.vector_store %arg7[%c0_29, %c0_30, %c640], %30 {strides = array<i32>} : memref<8x8x1152xbf16, #tpu.memory_space<vmem>>, vector<8x8x128xbf16>,
    %c1_i32 = arith.constant 1 : i32
    %32 = arith.addi %c1_i32, %1 : i32
    %c0_31 = arith.constant 0 : index
    %33 = arith.index_cast %32 : i32 to index
    %c0_32 = arith.constant 0 : index
    %c0_33 = arith.constant 0 : index
    %34 = vector.load %arg3[%c0_31, %33, %c0_32, %c0_33] : memref<1x36x9x128xbf16, #tpu.memory_space<vmem>>, vector<1x8x8x128xbf16>
    %35 = vector.shape_cast %34 : vector<1x8x8x128xbf16> to vector<8x8x128xbf16>
    %c0_34 = arith.constant 0 : index
    %c0_35 = arith.constant 0 : index
    %c768 = arith.constant 768 : index
    %36 = vector.load %arg7[%c0_34, %c0_35, %c768] : memref<8x8x1152xbf16, #tpu.memory_space<vmem>>, vector<8x8x128xbf16>
    tpu.vector_store %arg7[%c0_34, %c0_35, %c768], %35 {strides = array<i32>} : memref<8x8x1152xbf16, #tpu.memory_space<vmem>>, vector<8x8x128xbf16>,
    %c10_i32 = arith.constant 10 : i32
    %37 = arith.addi %c10_i32, %1 : i32
    %c0_36 = arith.constant 0 : index
    %38 = arith.index_cast %37 : i32 to index
    %c0_37 = arith.constant 0 : index
    %c0_38 = arith.constant 0 : index
    %39 = vector.load %arg3[%c0_36, %38, %c0_37, %c0_38] : memref<1x36x9x128xbf16, #tpu.memory_space<vmem>>, vector<1x8x8x128xbf16>
    %40 = vector.shape_cast %39 : vector<1x8x8x128xbf16> to vector<8x8x128xbf16>
    %c0_39 = arith.constant 0 : index
    %c0_40 = arith.constant 0 : index
    %c896 = arith.constant 896 : index
    %41 = vector.load %arg7[%c0_39, %c0_40, %c896] : memref<8x8x1152xbf16, #tpu.memory_space<vmem>>, vector<8x8x128xbf16>
    tpu.vector_store %arg7[%c0_39, %c0_40, %c896], %40 {strides = array<i32>} : memref<8x8x1152xbf16, #tpu.memory_space<vmem>>, vector<8x8x128xbf16>,
    %c1_i32_41 = arith.constant 1 : i32
    %42 = arith.addi %c1_i32_41, %1 : i32
    %c0_42 = arith.constant 0 : index
    %43 = arith.index_cast %42 : i32 to index
    %c1_43 = arith.constant 1 : index
    %c0_44 = arith.constant 0 : index
    %44 = vector.load %arg3[%c0_42, %43, %c1_43, %c0_44] : memref<1x36x9x128xbf16, #tpu.memory_space<vmem>>, vector<1x8x8x128xbf16>
    %45 = vector.shape_cast %44 : vector<1x8x8x128xbf16> to vector<8x8x128xbf16>
    %c0_45 = arith.constant 0 : index
    %c0_46 = arith.constant 0 : index
    %c1024 = arith.constant 1024 : index
    %46 = vector.load %arg7[%c0_45, %c0_46, %c1024] : memref<8x8x1152xbf16, #tpu.memory_space<vmem>>, vector<8x8x128xbf16>
    tpu.vector_store %arg7[%c0_45, %c0_46, %c1024], %45 {strides = array<i32>} : memref<8x8x1152xbf16, #tpu.memory_space<vmem>>, vector<8x8x128xbf16>,
    %c0_47 = arith.constant 0 : index
    %c0_48 = arith.constant 0 : index
    %c0_49 = arith.constant 0 : index
    %47 = vector.load %arg7[%c0_47, %c0_48, %c0_49] : memref<8x8x1152xbf16, #tpu.memory_space<vmem>>, vector<8x8x1152xbf16>
    %48 = vector.shape_cast %47 : vector<8x8x1152xbf16> to vector<64x1152xbf16>
    %c0_50 = arith.constant 0 : index
    %c0_51 = arith.constant 0 : index
    %49 = vector.load %arg4[%c0_50, %c0_51] : memref<1152x128xbf16, #tpu.memory_space<vmem>>, vector<1152x128xbf16>
    %cst = arith.constant dense<0.000000e+00> : vector<64x128xf32>
    %50 = tpu.matmul %48, %49, %cst {dimension_numbers = #tpu.dot_dimension_numbers<[1], [0], [0], [1], [0, 0, 1, 1], [], []>} : vector<64x1152xbf16>, vector<1152x128xbf16>, vector<64x128xf32> -> vector<64x128xf32>
    %51 = vector.shape_cast %50 : vector<64x128xf32> to vector<1x8x8x128xf32>
    %52 = arith.truncf %51 : vector<1x8x8x128xf32> to vector<1x8x8x128xbf16>
    %c0_52 = arith.constant 0 : index
    %c0_53 = arith.constant 0 : index
    %c0_54 = arith.constant 0 : index
    %c0_55 = arith.constant 0 : index
    %53 = vector.load %arg5[%c0_52, %c0_53, %c0_54, %c0_55] : memref<1x8x8x128xbf16, #tpu.memory_space<vmem>>, vector<1x8x8x128xbf16>
    tpu.vector_store %arg5[%c0_52, %c0_53, %c0_54, %c0_55], %52 {strides = array<i32>} : memref<1x8x8x128xbf16, #tpu.memory_space<vmem>>, vector<1x8x8x128xbf16>,
    %cst_56 = arith.constant dense<0.000000e+00> : vector<128xf32>
    %54 = vector.multi_reduction <add>, %50, %cst_56 [0] : vector<64x128xf32> to vector<128xf32>
    %55 = vector.shape_cast %54 : vector<128xf32> to vector<1x128xf32>
    %56 = arith.mulf %50, %50 : vector<64x128xf32>
    %cst_57 = arith.constant dense<0.000000e+00> : vector<128xf32>
    %57 = vector.multi_reduction <add>, %56, %cst_57 [0] : vector<64x128xf32> to vector<128xf32>
    %58 = vector.shape_cast %57 : vector<128xf32> to vector<1x128xf32>
    %59 = tpu.concatenate %55, %58 in 0 : vector<1x128xf32>, vector<1x128xf32> -> vector<2x128xf32>
    %c0_58 = arith.constant 0 : index
    %c0_59 = arith.constant 0 : index
    %c0_60 = arith.constant 0 : index
    %c0_61 = arith.constant 0 : index
    %60 = vector.load %arg6[%c0_58, %c0_59, %c0_60, %c0_61] : memref<1x1x2x128xf32, #tpu.memory_space<vmem>>, vector<1x1x2x128xf32>
    %61 = vector.shape_cast %60 : vector<1x1x2x128xf32> to vector<2x128xf32>
    %62 = vector.shape_cast %59 : vector<2x128xf32> to vector<1x1x2x128xf32>
    tpu.vector_store %arg6[%c0_58, %c0_59, %c0_60, %c0_61], %62 {strides = array<i32>} : memref<1x1x2x128xf32, #tpu.memory_space<vmem>>, vector<1x1x2x128xf32>,
    return
  }
  func.func @transform_0(%arg0: i32, %arg1: i32, %arg2: i32) -> (i32, i32, i32, i32) {
    %c0_i32 = arith.constant 0 : i32
    %c0_i32_0 = arith.constant 0 : i32
    %c0_i32_1 = arith.constant 0 : i32
    %c0_i32_2 = arith.constant 0 : i32
    return %arg0, %c0_i32, %c0_i32_0, %c0_i32_1 : i32, i32, i32, i32
  }
  func.func @transform_1(%arg0: i32, %arg1: i32, %arg2: i32) -> (i32, i32) {
    %c0_i32 = arith.constant 0 : i32
    %c0_i32_0 = arith.constant 0 : i32
    return %c0_i32, %arg2 : i32, i32
  }
  func.func @transform_2(%arg0: i32, %arg1: i32, %arg2: i32) -> (i32, i32, i32, i32) {
    %c0_i32 = arith.constant 0 : i32
    %c0_i32_0 = arith.constant 0 : i32
    return %arg0, %arg1, %c0_i32, %arg2 : i32, i32, i32, i32
  }
  func.func @transform_3(%arg0: i32, %arg1: i32, %arg2: i32) -> (i32, i32, i32, i32) {
    %c0_i32 = arith.constant 0 : i32
    %c0_i32_0 = arith.constant 0 : i32
    return %arg0, %arg1, %c0_i32, %arg2 : i32, i32, i32, i32
  }
}

</mosaic_0001>

<bundles_post_ra>
// kernel: tpu_custom_call.1
= control target key start
LH: loop header
LB: loop body
LE: loop exit
PB: predicated region body
PF: predicated region fallthrough
CT: control target
= control target key end

     0   :  { %9 = vsyncpa [#allocation4], 0  ;;  %s3464_s0 = inlined_call_operand.vmem [shape: bf16[2,36,9,128], index: 0, kind: input, shape index: {}]   ;;  %s3465_s1 = inlined_call_operand.vmem [shape: bf16[1152,128], index: 1, kind: input, shape index: {}]   ;;  %s3466_s2 = inlined_call_operand.hbm [shape: bf16[2,8,8,128], index: 2, kind: output, shape index: {0}]   ;;  %s3467_s3 = inlined_call_operand.hbm [shape: f32[2,1,2,128], index: 3, kind: output, shape index: {1}]  }
   0x1   :  { %11 = vsyncpa [#allocation4 + $0x1], 0 }
   0x2   :  { %12 = vsyncpa [#allocation6], 0 }
   0x3   :  { %14 = vsyncpa [#allocation6 + $0x1], 0  ;;  %s2893_s12 = smov 0   ;;  %s2895_s13 = smov 0  }
   0x4   :  { %s2897_s14 = smov 0   ;;  %s2899_s15 = smov 0  }
   0x5   :  { %s2901_s16 = smov 0   ;;  %s2903_s17 = smov 0  }
   0x6 LB: > { %s2144_s18 = sadd.s32 4294967295, %s2867_s17   ;;  %s2145_s19 = sadd.s32 4294967294, %s2867_s17   ;;  %s2867_s17 = sphi %s2903_s17, %s20_s17   ;;  %s2863_s16 = sphi %s2901_s16, %s3476_s16   ;;  %s2859_s15 = sphi %s2899_s15, %s3475_s15   ;;  %s2855_s14 = sphi %s2897_s14, %s3474_s14   ;;  %s2851_s13 = sphi %s2895_s13, %s3473_s13   ;;  %s2847_s12 = sphi %s2893_s12, %s3472_s12  }
   0x7   : > { %s39_s20 = sadd.s32 1, %s2863_s16  ;;  %s102_s21 = sadd.s32 1, %s2855_s14 }
   0x8   : > { %p41_p0 = scmp.ge.s32.totalorder %s39_s20, 2  ;;  %p112_p1 = scmp.ne.s32.totalorder %s2855_s14, %s2851_s13 }
   0x9   : > { %p113_p2 = scmp.eq.s32.totalorder %s2144_s18, 1  ;;  %p118_p3 = scmp.ne.s32.totalorder %s2851_s13, %s2847_s12 }
   0xa   : > { %s3478_s20 = smov (%p41_p0, %s39_s20), 0  ;;  %p119_p5 = scmp.eq.s32.totalorder %s2145_s19, 1 }
   0xb   : > { %p2933_p4 = por %p113_p2, %p112_p1  ;;  %s95_s23 = ssub.s32 %s2863_s16, %s3478_s20 }
   0xc   : > { %p2149_p6 = scmp.ge.s32.totalorder %s2867_s17, 1  ;;  %p100_p7 = scmp.eq.s32.totalorder %s95_s23, 0 }
   0xd   : > { %p2940_p8 = por %p119_p5, %p118_p3  ;;  %p182_p9 = scmp.lt.s32.totalorder %s2867_s17, 3 }
   0xe   : > { %s2946_s25 = scalar_select %p100_p7, %s2855_s14, %s102_s21  }
   0xf   : > { %p183_p10 = pnand %p2149_p6, %p182_p9 }
  0x10   : > { %v2639_v0 = vld [vmem:[%s3465_s1 + $0x40] sm:$0xff] (!%p183_p10)   ;;  %v2643_v4 = vld [vmem:[%s3465_s1 + $0x48] sm:$0xff] (!%p183_p10)   ;;  %v2647_v8 = vld [vmem:[%s3465_s1 + $0x50] sm:$0xff] (!%p183_p10)   ;;  %p215_p11 = scmp.lt.s32.totalorder (!%p183_p10), %s2859_s15, 1  ;;  %vm282_vm0 = vsmask.f32 (!%p183_p10), 3328 }
  0x11   : > { %186 = sbr.rel (%p183_p10) target bundleno = 414 (0x19e), region = 28  ;;  %v2640_v1 = vld [vmem:[%s3465_s1 + $0xc0] sm:$0xff] (!%p183_p10)   ;;  %2364 = vmatprep.subr.bf16.mxu0 (!%p183_p10), %v2639_v0  ;;  %v2644_v5 = vld [vmem:[%s3465_s1 + $0xc8] sm:$0xff] (!%p183_p10)   ;;  %v2648_v9 = vld [vmem:[%s3465_s1 + $0xd0] sm:$0xff] (!%p183_p10)   ;;  %vm283_vm1 = vsmask.f32 (!%p183_p10), 7440 }
  0x12   : > { %v2641_v2 = vld [vmem:[%s3465_s1] sm:$0xff] (!%p183_p10)   ;;  %2404 = vmatprep.subr.bf16.mxu1 (!%p183_p10), %v2640_v1  ;;  %v2645_v6 = vld [vmem:[%s3465_s1 + $0x8] sm:$0xff] (!%p183_p10)   ;;  %v2649_v10 = vld [vmem:[%s3465_s1 + $0x10] sm:$0xff] (!%p183_p10)   ;;  %s2869_s9 = smov (!%p183_p10), [#allocation3]  }
  0x13   : > { %v2642_v3 = vld [vmem:[%s3465_s1 + $0x80] sm:$0xff] (!%p183_p10)   ;;  %2365 = vmatpush3.bf16.msra.mxu0 (!%p183_p10), %v2641_v2  ;;  %v2646_v7 = vld [vmem:[%s3465_s1 + $0x88] sm:$0xff] (!%p183_p10)   ;;  %v2650_v11 = vld [vmem:[%s3465_s1 + $0x90] sm:$0xff] (!%p183_p10)   ;;  %s2761_s10 = sshll.u32 (!%p183_p10), %s2869_s9, 4  ;;  %s2762_s10 = int_to_ptr.vmem [resolvable:$false] %s2761_s10 }
  0x14   : > { %2405 = vmatpush3.bf16.msra.mxu1 (!%p183_p10), %v2642_v3  ;;  %2366 = vmatprep.subr.bf16.mxu0 (!%p183_p10), %v2643_v4  ;;  %v2651_v12 = vld [vmem:[%s3465_s1 + $0x58] sm:$0xff] (!%p183_p10)   ;;  %v2655_v16 = vld [vmem:[%s3465_s1 + $0x60] sm:$0xff] (!%p183_p10)   ;;  %v2659_v20 = vld [vmem:[%s3465_s1 + $0x68] sm:$0xff] (!%p183_p10)   ;;  %s2763_s18 = scalar_lea.vmem (!%p183_p10), %s2762_s10, 1024 }
  0x15   : > { %2406 = vmatprep.subr.bf16.mxu1 (!%p183_p10), %v2644_v5  ;;  %v2652_v13 = vld [vmem:[%s3465_s1 + $0xd8] sm:$0xff] (!%p183_p10)   ;;  %v2656_v17 = vld [vmem:[%s3465_s1 + $0xe0] sm:$0xff] (!%p183_p10)   ;;  %v2660_v21 = vld [vmem:[%s3465_s1 + $0xe8] sm:$0xff] (!%p183_p10)  }
  0x16   : > { %v2653_v14 = vld [vmem:[%s3465_s1 + $0x18] sm:$0xff] (!%p183_p10)   ;;  %v2657_v18 = vld [vmem:[%s3465_s1 + $0x20] sm:$0xff] (!%p183_p10)   ;;  %v2661_v22 = vld [vmem:[%s3465_s1 + $0x28] sm:$0xff] (!%p183_p10)  }
  0x17   : > { %2367 = vmatpush3.bf16.msra.mxu0 (!%p183_p10), %v2645_v6  ;;  %v2654_v15 = vld [vmem:[%s3465_s1 + $0x98] sm:$0xff] (!%p183_p10)   ;;  %v2658_v19 = vld [vmem:[%s3465_s1 + $0xa0] sm:$0xff] (!%p183_p10)   ;;  %v2662_v23 = vld [vmem:[%s3465_s1 + $0xa8] sm:$0xff] (!%p183_p10)  }
  0x18   : > { %2407 = vmatpush3.bf16.msra.mxu1 %v2646_v7  ;;  %2368 = vmatprep.subr.bf16.mxu0 %v2647_v8  ;;  %s216_s11 = scalar_select %p215_p11, %s2859_s15, 1  ;;  %v2663_v24 = vld [vmem:[%s3465_s1 + $0x70] sm:$0xff]   ;;  %v2667_v28 = vld [vmem:[%s3465_s1 + $0x78] sm:$0xff]   ;;  %v2677_v43 = vld [vmem:[%s3465_s1 + $0x140] sm:$0xff]  }
  0x19   : > { %2408 = vmatprep.subr.bf16.mxu1 %v2648_v9  ;;  %v2664_v25 = vld [vmem:[%s3465_s1 + $0xf0] sm:$0xff]   ;;  %v2668_v29 = vld [vmem:[%s3465_s1 + $0xf8] sm:$0xff]   ;;  %v2678_v48 = vld [vmem:[%s3465_s1 + $0x1c0] sm:$0xff]  }
  0x1a   : > { %v2665_v26 = vld [vmem:[%s3465_s1 + $0x30] sm:$0xff]   ;;  %s2576_s30 = smul.u32 288, %s216_s11  ;;  %v2669_v30 = vld [vmem:[%s3465_s1 + $0x38] sm:$0xff]   ;;  %vm3069_vm2 = vmor %vm282_vm0, %vm283_vm1 }
  0x1b   : > { %2369 = vmatpush3.bf16.msra.mxu0 %v2649_v10  ;;  %v2666_v27 = vld [vmem:[%s3465_s1 + $0xb0] sm:$0xff]   ;;  %v2670_v31 = vld [vmem:[%s3465_s1 + $0xb8] sm:$0xff]   ;;  %v2679_v57 = vld [vmem:[%s3465_s1 + $0x100] sm:$0xff]  }
  0x1c   : > { %2409 = vmatpush3.bf16.msra.mxu1 %v2650_v11  ;;  %2370 = vmatprep.subr.bf16.mxu0 %v2651_v12  ;;  %s3046_s21 = scalar_lea.vmem %s3464_s0, %s2576_s30  ;;  %v2681_v0 = vld [vmem:[%s3465_s1 + $0x148] sm:$0xff]   ;;  %s2340_s30 = sshll.u32 %s2859_s15, 9 }
  0x1d   : > { %2410 = vmatprep.subr.bf16.mxu1 %v2652_v13  ;;  %v230_v32 = vld [vmem:[%s3046_s21] sm:$0xf]  ;;  %v231_v33 = vld [vmem:[%s3046_s21 + $0x8] sm:$0xf]  ;;  %v2154_v35 = vld [vmem:[%s3046_s21 + $0x50] sm:$0xf]  ;;  %s3380_s6 = scalar_lea.hbm %s3466_s2, %s2340_s30 }
  0x1e   : > { %v2153_v34 = vld [vmem:[%s3046_s21 + $0x48] sm:$0xf]  ;;  %238 = vst [vmem:[#allocation2] sm:$0xf] %v230_v32  ;;  %239 = vst [vmem:[#allocation2 + $0x24] sm:$0xf] %v231_v33 }
  0x1f   : > { %2371 = vmatpush3.bf16.msra.mxu0 %v2653_v14  ;;  %258 = vst [vmem:[#allocation2 + $0x4] sm:$0xf] %v2153_v34  ;;  %v266_v36 = vld [vmem:[%s3046_s21] sm:$0xf]  ;;  %v267_v37 = vld [vmem:[%s3046_s21 + $0x4] sm:$0x1] }
  0x20   : > { %2411 = vmatpush3.bf16.msra.mxu1 %v2654_v15  ;;  %2372 = vmatprep.subr.bf16.mxu0 %v2655_v16  ;;  %259 = vst [vmem:[#allocation2 + $0x28] sm:$0xf] %v2154_v35  ;;  %v268_v38 = vld [vmem:[%s3046_s21 + $0x8] sm:$0xf]  ;;  %v269_v39 = vld [vmem:[%s3046_s21 + $0xc] sm:$0x1] }
  0x21   : > { %2412 = vmatprep.subr.bf16.mxu1 %v2656_v17  ;;  %v286_v40 = vshrl.u32 %v266_v36, 16  ;;  %v289_v41 = vshll.u32 %v266_v36, 16  ;;  %v295_v42 = vshll.u32 %v267_v37, 16  ;;  %v300_v44 = vshrl.u32 %v268_v38, 16  ;;  %v2161_v47 = vld [vmem:[%s3046_s21 + $0x90] sm:$0xf] }
  0x22   : > { %v303_v45 = vshll.u32 %v268_v38, 16  ;;  %v309_v46 = vshll.u32 %v269_v39, 16  ;;  %v2162_v51 = vld [vmem:[%s3046_s21 + $0x98] sm:$0xf]  ;;  %425 = vst [vmem:[#allocation2 + $0xc] sm:$0xf] %v2161_v47 }
  0x23   : > { %2373 = vmatpush3.bf16.msra.mxu0 %v2657_v18  ;;  %v288_v49 = vrot.slane %v286_v40, 4  ;;  %v291_v50 = vrot.slane %v289_v41, 5  ;;  %v297_v53 = vrot.slane %v295_v42, 5  ;;  %v302_v54 = vrot.slane %v300_v44, 4  ;;  %426 = vst [vmem:[#allocation2 + $0x30] sm:$0xf] %v2162_v51 }
  0x24   : > { %2413 = vmatpush3.bf16.msra.mxu1 %v2658_v19  ;;  %2374 = vmatprep.subr.bf16.mxu0 %v2659_v20  ;;  %v305_v55 = vrot.slane %v303_v45, 5  ;;  %v311_v59 = vrot.slane %v309_v46, 5  ;;  %v2683_v3 = vld [vmem:[%s3465_s1 + $0x108] sm:$0xff]   ;;  %v232_v4 = vld [vmem:[%s3046_s21 + $0x10] sm:$0xf]  ;;  %v2680_v16 = vld [vmem:[%s3465_s1 + $0x180] sm:$0xff]  }
  0x25   : > { %2414 = vmatprep.subr.bf16.mxu1 %v2660_v21  ;;  %v292_v56 = vor.u32 %v291_v50, %v288_v49  ;;  %v2671_v60 = vld [vmem:[#allocation2] ss:$36 sps:$4 sm:$0xff]   ;;  %v233_v5 = vld [vmem:[%s3046_s21 + $0x18] sm:$0xf]  ;;  %240 = vst [vmem:[#allocation2 + $0x48] sm:$0xf] %v232_v4 }
  0x26   : > { %v306_v58 = vor.u32 %v305_v55, %v302_v54  ;;  %v2155_v6 = vld [vmem:[%s3046_s21 + $0x58] sm:$0xf]  ;;  %v2156_v7 = vld [vmem:[%s3046_s21 + $0x60] sm:$0xf]  ;;  %241 = vst [vmem:[#allocation2 + $0x6c] sm:$0xf] %v233_v5 }
  0x27   : > { %2375 = vmatpush3.bf16.msra.mxu0 %v2661_v22  ;;  %v2673_v61 = vld [vmem:[#allocation2 + $0x4] ss:$36 sps:$4 sm:$0xff]   ;;  %v293_v62 = vrot.slane %v292_v56, 4  ;;  %260 = vst [vmem:[#allocation2 + $0x4c] sm:$0xf] %v2155_v6  ;;  %v2692_v40 = vld [vmem:[%s3465_s1 + $0x110] sm:$0xff]  }
  0x28   : > { %2415 = vmatpush3.bf16.msra.mxu1 %v2662_v23  ;;  %2376 = vmatprep.subr.bf16.mxu0 %v2663_v24  ;;  %v307_v63 = vrot.slane %v306_v58, 4  ;;  %261 = vst [vmem:[#allocation2 + $0x70] sm:$0xf] %v2156_v7  ;;  %v270_v8 = vld [vmem:[%s3046_s21 + $0x10] sm:$0xf]  ;;  %v2682_v21 = vld [vmem:[%s3465_s1 + $0x1c8] sm:$0xff]  }
  0x29   : > { %2416 = vmatprep.subr.bf16.mxu1 %v2664_v25  ;;  %1613 = vmatprep.mubr.bf16.mxu0 %v2673_v61  ;;  %v298_v1 = vsel %vm3069_vm2, %v293_v62, %v297_v53  ;;  %v271_v9 = vld [vmem:[%s3046_s21 + $0x14] sm:$0x1]  ;;  %v272_v10 = vld [vmem:[%s3046_s21 + $0x18] sm:$0xf]  ;;  %v273_v11 = vld [vmem:[%s3046_s21 + $0x1c] sm:$0x1] }
  0x2a   : > { %v312_v2 = vsel %vm3069_vm2, %v307_v63, %v311_v59  ;;  %405 = vst [vmem:[#allocation2 + $0x8] sm:$0xf] %v298_v1  ;;  %v314_v12 = vshrl.u32 %v270_v8, 16  ;;  %v317_v13 = vshll.u32 %v270_v8, 16  ;;  %v323_v14 = vshll.u32 %v271_v9, 16  ;;  %v2690_v25 = vld [vmem:[%s3465_s1 + $0x150] sm:$0xff]  }
  0x2b   : > { %2377 = vmatpush3.bf16.msra.mxu0 %v2665_v26  ;;  %406 = vst [vmem:[#allocation2 + $0x2c] sm:$0xf] %v312_v2  ;;  %v328_v15 = vshrl.u32 %v272_v10, 16  ;;  %v331_v17 = vshll.u32 %v272_v10, 16  ;;  %v337_v18 = vshll.u32 %v273_v11, 16  ;;  %v2684_v32 = vld [vmem:[%s3465_s1 + $0x188] sm:$0xff]  }
  0x2c   : > { %2417 = vmatpush3.bf16.msra.mxu1 %v2666_v27  ;;  %2378 = vmatprep.subr.bf16.mxu0 %v2667_v28  ;;  %v2163_v19 = vld [vmem:[%s3046_s21 + $0xa0] sm:$0xf]  ;;  %v2164_v20 = vld [vmem:[%s3046_s21 + $0xa8] sm:$0xf]  ;;  %v316_v22 = vrot.slane %v314_v12, 4  ;;  %v319_v23 = vrot.slane %v317_v13, 5 }
  0x2d   : > { %2418 = vmatprep.subr.bf16.mxu1 %v2668_v29  ;;  %v330_v24 = vrot.slane %v328_v15, 4  ;;  %427 = vst [vmem:[#allocation2 + $0x54] sm:$0xf] %v2163_v19  ;;  %428 = vst [vmem:[#allocation2 + $0x78] sm:$0xf] %v2164_v20  ;;  %v333_v28 = vrot.slane %v331_v17, 5 }
  0x2e   : > { %v2676_v27 = vld [vmem:[#allocation2 + $0xc] ss:$36 sps:$4 sm:$0xff]   ;;  %v320_v29 = vor.u32 %v319_v23, %v316_v22  ;;  %v2694_v44 = vld [vmem:[%s3465_s1 + $0x158] sm:$0xff]   ;;  %v235_v50 = vld [vmem:[%s3046_s21 + $0x28] sm:$0xf] }
  0x2f   : > { %2379 = vmatpush3.bf16.msra.mxu0 %v2669_v30  ;;  %v325_v30 = vrot.slane %v323_v14, 5  ;;  %1678 = vmatprep.mubr.bf16.mxu1 %v2676_v27  ;;  %v334_v33 = vor.u32 %v333_v28, %v330_v24  ;;  %v791_v34 = vld [vmem:[#allocation2 + $0x48] sm:$0xff]  ;;  %v2691_v42 = vld [vmem:[%s3465_s1 + $0x1d0] sm:$0xff]   ;;  %v2696_v46 = vld [vmem:[%s3465_s1 + $0x118] sm:$0xff]   ;;  %243 = vst [vmem:[#allocation2 + $0xb4] sm:$0xf] %v235_v50 }
  0x30   : > { %2419 = vmatpush3.bf16.msra.mxu1 %v2670_v31  ;;  %2444 = vmatprep.subr.bf16.mxu0 %v2677_v43  ;;  %v339_v31 = vrot.slane %v337_v18, 5  ;;  %v796_v35 = vld [vmem:[#allocation2 + $0x6c] sm:$0xff]  ;;  %v321_v37 = vrot.slane %v320_v29, 4  ;;  %v2695_v47 = vld [vmem:[%s3465_s1 + $0x1d8] sm:$0xff]   ;;  %v2157_v51 = vld [vmem:[%s3046_s21 + $0x68] sm:$0xf] }
  0x31   : > { %2484 = vmatprep.subr.bf16.mxu1 %v2678_v48  ;;  %v2685_v36 = vld [vmem:[#allocation2 + $0x4c] ss:$36 sps:$4 sm:$0xff]   ;;  %v335_v38 = vrot.slane %v334_v33, 4  ;;  %v2234_v39 = vcombine.low %v791_v34, %v796_v35  ;;  %v234_v48 = vld [vmem:[%s3046_s21 + $0x20] sm:$0xf]  ;;  %v2697_v49 = vld [vmem:[%s3465_s1 + $0x198] sm:$0xff]  }
  0x32   : > { %1614 = vmatmul.mubr.bf16.vlgmr.msra.gmra.mrb[0].mxu0 %v2671_v60  ;;  %v2674_v26 = vld [vmem:[#allocation2 + $0x8] ss:$36 sps:$4 sm:$0xff]   ;;  %v326_v41 = vsel %vm3069_vm2, %v321_v37, %v325_v30  ;;  %v2693_v45 = vld [vmem:[%s3465_s1 + $0x190] sm:$0xff]   ;;  %242 = vst [vmem:[#allocation2 + $0x90] sm:$0xf] %v234_v48  ;;  %v2703_v1 = vld [vmem:[%s3465_s1 + $0x160] sm:$0xff]  }
  0x33   : > { %2445 = vmatpush3.bf16.msra.mxu0 %v2679_v57  ;;  %1679 = vmatmul.mubr.bf16.vlgmr.msra.gmra.mrb[0].mxu1 %v2674_v26  ;;  %v340_v43 = vsel %vm3069_vm2, %v335_v38, %v339_v31  ;;  %407 = vst [vmem:[#allocation2 + $0x50] sm:$0xf] %v326_v41  ;;  %v2158_v53 = vld [vmem:[%s3046_s21 + $0x70] sm:$0xf]  ;;  %262 = vst [vmem:[#allocation2 + $0x94] sm:$0xf] %v2157_v51 }
  0x34   : > { %2446 = vmatprep.subr.bf16.mxu0 %v2681_v0  ;;  %2485 = vmatpush3.bf16.msra.mxu1 %v2680_v16  ;;  %408 = vst [vmem:[#allocation2 + $0x74] sm:$0xf] %v340_v43  ;;  %263 = vst [vmem:[#allocation2 + $0xb8] sm:$0xf] %v2158_v53  ;;  %v274_v54 = vld [vmem:[%s3046_s21 + $0x20] sm:$0xf] }
  0x35   : > { %2486 = vmatprep.subr.bf16.mxu1 %v2682_v21  ;;  %1621 = vmatprep.mubr.bf16.mxu0 %v2685_v36  ;;  %v275_v55 = vld [vmem:[%s3046_s21 + $0x24] sm:$0x1]  ;;  %v276_v56 = vld [vmem:[%s3046_s21 + $0x28] sm:$0xf]  ;;  %v277_v57 = vld [vmem:[%s3046_s21 + $0x2c] sm:$0x1] }
  0x36   : > { %v342_v58 = vshrl.u32 %v274_v54, 16  ;;  %v345_v59 = vshll.u32 %v274_v54, 16  ;;  %v351_v60 = vshll.u32 %v275_v55, 16  ;;  %v356_v61 = vshrl.u32 %v276_v56, 16  ;;  %v2165_v0 = vld [vmem:[%s3046_s21 + $0xb0] sm:$0xf] }
  0x37   : > { %2447 = vmatpush3.bf16.msra.mxu0 %v2683_v3  ;;  %v359_v62 = vshll.u32 %v276_v56, 16  ;;  %v365_v63 = vshll.u32 %v277_v57, 16  ;;  %v2687_v2 = vld [vmem:[#allocation2 + $0x54] ss:$36 sps:$4 sm:$0xff]   ;;  %429 = vst [vmem:[#allocation2 + $0x9c] sm:$0xf] %v2165_v0 }
  0x38   : > { %2448 = vmatprep.subr.bf16.mxu0 %v2690_v25  ;;  %2487 = vmatpush3.bf16.msra.mxu1 %v2684_v32  ;;  %v344_v4 = vrot.slane %v342_v58, 4  ;;  %v347_v5 = vrot.slane %v345_v59, 5  ;;  %v353_v6 = vrot.slane %v351_v60, 5  ;;  %v358_v7 = vrot.slane %v356_v61, 4  ;;  %v2166_v9 = vld [vmem:[%s3046_s21 + $0xb8] sm:$0xf] }
  0x39   : > { %2488 = vmatprep.subr.bf16.mxu1 %v2691_v42  ;;  %v361_v8 = vrot.slane %v359_v62, 5  ;;  %1686 = vmatprep.mubr.bf16.mxu1 %v2687_v2  ;;  %v367_v10 = vrot.slane %v365_v63, 5  ;;  %430 = vst [vmem:[#allocation2 + $0xc0] sm:$0xf] %v2166_v9  ;;  %v2704_v11 = vld [vmem:[%s3465_s1 + $0x1e0] sm:$0xff]   ;;  %v2707_v24 = vld [vmem:[%s3465_s1 + $0x168] sm:$0xff]  }
  0x3a   : > { %1622 = vmatmul.mubr.bf16.gmra.mrb[4].mxu0 %v2234_v39  ;;  %v348_v12 = vor.u32 %v347_v5, %v344_v4  ;;  %v801_v14 = vld [vmem:[#allocation2 + $0x90] sm:$0xff]  ;;  %v2705_v20 = vld [vmem:[%s3465_s1 + $0x120] sm:$0xff]   ;;  %v2708_v25 = vld [vmem:[%s3465_s1 + $0x1e8] sm:$0xff]  }
  0x3b   : > { %2449 = vmatpush3.bf16.msra.mxu0 %v2692_v40  ;;  %v2689_v3 = vld [vmem:[#allocation2 + $0x50] ss:$36 sps:$4 sm:$0xff]   ;;  %v362_v13 = vor.u32 %v361_v8, %v358_v7  ;;  %v2706_v21 = vld [vmem:[%s3465_s1 + $0x1a0] sm:$0xff]   ;;  %v2709_v26 = vld [vmem:[%s3465_s1 + $0x128] sm:$0xff]  }
  0x3c   : > { %2450 = vmatprep.subr.bf16.mxu0 %v2694_v44  ;;  %2489 = vmatpush3.bf16.msra.mxu1 %v2693_v45  ;;  %v806_v15 = vld [vmem:[#allocation2 + $0xb4] sm:$0xff]  ;;  %v349_v17 = vrot.slane %v348_v12, 4  ;;  %v2710_v27 = vld [vmem:[%s3465_s1 + $0x1a8] sm:$0xff]   ;;  %v236_v28 = vld [vmem:[%s3046_s21 + $0x30] sm:$0xf] }
  0x3d   : > { %2490 = vmatprep.subr.bf16.mxu1 %v2695_v47  ;;  %1687 = vmatmul.mubr.bf16.gmra.mrb[4].mxu1 %v2689_v3  ;;  %v2698_v16 = vld [vmem:[#allocation2 + $0x94] ss:$36 sps:$4 sm:$0xff]   ;;  %v363_v18 = vrot.slane %v362_v13, 4  ;;  %v2243_v19 = vcombine.low %v801_v14, %v806_v15  ;;  %244 = vst [vmem:[#allocation2 + $0xd8] sm:$0xf] %v236_v28 }
  0x3e   : > { %1629 = vmatprep.mubr.bf16.mxu0 %v2698_v16  ;;  %v354_v22 = vsel %vm3069_vm2, %v349_v17, %v353_v6  ;;  %v237_v29 = vld [vmem:[%s3046_s21 + $0x38] sm:$0xf]  ;;  %v2160_v31 = vld [vmem:[%s3046_s21 + $0x80] sm:$0xf]  ;;  %v278_v32 = vld [vmem:[%s3046_s21 + $0x30] sm:$0xf] }
  0x3f   : > { %2451 = vmatpush3.bf16.msra.mxu0 %v2696_v46  ;;  %v368_v23 = vsel %vm3069_vm2, %v363_v18, %v367_v10  ;;  %409 = vst [vmem:[#allocation2 + $0x98] sm:$0xf] %v354_v22  ;;  %v2159_v30 = vld [vmem:[%s3046_s21 + $0x78] sm:$0xf]  ;;  %245 = vst [vmem:[#allocation2 + $0xfc] sm:$0xf] %v237_v29 }
  0x40   : > { %2452 = vmatprep.subr.bf16.mxu0 %v2703_v1  ;;  %2491 = vmatpush3.bf16.msra.mxu1 %v2697_v49  ;;  %410 = vst [vmem:[#allocation2 + $0xbc] sm:$0xf] %v368_v23  ;;  %264 = vst [vmem:[#allocation2 + $0xdc] sm:$0xf] %v2159_v30  ;;  %v279_v33 = vld [vmem:[%s3046_s21 + $0x34] sm:$0x1] }
  0x41   : > { %2492 = vmatprep.subr.bf16.mxu1 %v2704_v11  ;;  %265 = vst [vmem:[#allocation2 + $0x100] sm:$0xf] %v2160_v31  ;;  %v280_v34 = vld [vmem:[%s3046_s21 + $0x38] sm:$0xf]  ;;  %v281_v35 = vld [vmem:[%s3046_s21 + $0x3c] sm:$0x1] }
  0x42   : > { %1630 = vmatmul.mubr.bf16.gmra.mrb[8].mxu0 %v2243_v19  ;;  %v370_v36 = vshrl.u32 %v278_v32, 16  ;;  %v373_v37 = vshll.u32 %v278_v32, 16  ;;  %v379_v38 = vshll.u32 %v279_v33, 16  ;;  %v384_v39 = vshrl.u32 %v280_v34, 16  ;;  %v2167_v42 = vld [vmem:[%s3046_s21 + $0xc0] sm:$0xf] }
  0x43   : > { %2453 = vmatpush3.bf16.msra.mxu0 %v2705_v20  ;;  %v387_v40 = vshll.u32 %v280_v34, 16  ;;  %v393_v41 = vshll.u32 %v281_v35, 16  ;;  %v2168_v43 = vld [vmem:[%s3046_s21 + $0xc8] sm:$0xf]  ;;  %v2700_v44 = vld [vmem:[#allocation2 + $0x9c] ss:$36 sps:$4 sm:$0xff]  }
  0x44   : > { %2493 = vmatpush3.bf16.msra.mxu1 %v2706_v21  ;;  %2454 = vmatprep.subr.bf16.mxu0 %v2707_v24  ;;  %v372_v45 = vrot.slane %v370_v36, 4  ;;  %v375_v46 = vrot.slane %v373_v37, 5  ;;  %431 = vst [vmem:[#allocation2 + $0xe4] sm:$0xf] %v2167_v42  ;;  %432 = vst [vmem:[#allocation2 + $0x108] sm:$0xf] %v2168_v43 }
  0x45   : > { %2494 = vmatprep.subr.bf16.mxu1 %v2708_v25  ;;  %v386_v48 = vrot.slane %v384_v39, 4  ;;  %v389_v49 = vrot.slane %v387_v40, 5  ;;  %1694 = vmatprep.mubr.bf16.mxu1 %v2700_v44  ;;  %v381_v51 = vrot.slane %v379_v38, 5  ;;  %v2716_v53 = vld [vmem:[%s3465_s1 + $0x170] sm:$0xff]   ;;  %v395_v55 = vrot.slane %v393_v41, 5  ;;  %v2720_v3 = vld [vmem:[%s3465_s1 + $0x178] sm:$0xff]  }
  0x46   : > { %v376_v50 = vor.u32 %v375_v46, %v372_v45  ;;  %v2717_v56 = vld [vmem:[%s3465_s1 + $0x1f0] sm:$0xff]   ;;  %v2721_v4 = vld [vmem:[%s3465_s1 + $0x1f8] sm:$0xff]   ;;  %v2170_v8 = vld [vmem:[%s3046_s21 + $0xe0] sm:$0xf] }
  0x47   : > { %2455 = vmatpush3.bf16.msra.mxu0 %v2709_v26  ;;  %v2702_v47 = vld [vmem:[#allocation2 + $0x98] ss:$36 sps:$4 sm:$0xff]   ;;  %v390_v54 = vor.u32 %v389_v49, %v386_v48  ;;  %v2718_v63 = vld [vmem:[%s3465_s1 + $0x130] sm:$0xff]   ;;  %446 = vst [vmem:[#allocation2 + $0x34] sm:$0xf] %v2170_v8  ;;  %v3220_v21 = vld [vmem:[%s3465_s1 + $0x200] sm:$0xff]  }
  0x48   : > { %2495 = vmatpush3.bf16.msra.mxu1 %v2710_v27  ;;  %v811_v57 = vld [vmem:[#allocation2 + $0xd8] sm:$0xff]  ;;  %v377_v60 = vrot.slane %v376_v50, 4  ;;  %2456 = vmatprep.subr.bf16.mxu0 %v2716_v53  ;;  %v2719_v1 = vld [vmem:[%s3465_s1 + $0x1b0] sm:$0xff]   ;;  %v2193_v17 = vld [vmem:[%s3046_s21 + $0x8] sm:$0xf] }
  0x49   : > { %1695 = vmatmul.mubr.bf16.gmra.mrb[8].mxu1 %v2702_v47  ;;  %v816_v58 = vld [vmem:[#allocation2 + $0xfc] sm:$0xff]  ;;  %v391_v61 = vrot.slane %v390_v54, 4  ;;  %2496 = vmatprep.subr.bf16.mxu1 %v2717_v56  ;;  %v2169_v7 = vld [vmem:[%s3046_s21 + $0xd8] sm:$0xf]  ;;  %v2177_v9 = vld [vmem:[%s3046_s21 + $0x90] sm:$0xf] }
  0x4a   : > { %v2711_v59 = vld [vmem:[#allocation2 + $0xdc] ss:$36 sps:$4 sm:$0xff]   ;;  %v2252_v62 = vcombine.low %v811_v57, %v816_v58  ;;  %v382_v0 = vsel %vm3069_vm2, %v377_v60, %v381_v51  ;;  %445 = vst [vmem:[#allocation2 + $0x10] sm:$0xf] %v2169_v7  ;;  %v2178_v10 = vld [vmem:[%s3046_s21 + $0x94] sm:$0x1] }
  0x4b   : > { %1637 = vmatprep.mubr.bf16.mxu0 %v2711_v59  ;;  %v396_v2 = vsel %vm3069_vm2, %v391_v61, %v395_v55  ;;  %411 = vst [vmem:[#allocation2 + $0xe0] sm:$0xf] %v382_v0  ;;  %2457 = vmatpush3.bf16.msra.mxu0 %v2718_v63  ;;  %v2722_v5 = vld [vmem:[%s3465_s1 + $0x138] sm:$0xff]   ;;  %v470_v13 = vshrl.u32 %v2177_v9, 16  ;;  %v473_v14 = vshll.u32 %v2177_v9, 16  ;;  %v479_v15 = vshll.u32 %v2178_v10, 16 }
  0x4c   : > { %1638 = vmatmul.mubr.bf16.gmra.mrb[12].mxu0 %v2252_v62  ;;  %412 = vst [vmem:[#allocation2 + $0x104] sm:$0xf] %v396_v2  ;;  %2497 = vmatpush3.bf16.msra.mxu1 %v2719_v1  ;;  %v2723_v6 = vld [vmem:[%s3465_s1 + $0x1b8] sm:$0xff]   ;;  %v2194_v20 = vld [vmem:[%s3046_s21 + $0x10] sm:$0xf]  ;;  %v3242_v57 = vld [vmem:[%s3465_s1 + $0x208] sm:$0xff]  }
  0x4d   : > { %2458 = vmatprep.subr.bf16.mxu0 %v2720_v3  ;;  %2498 = vmatprep.subr.bf16.mxu1 %v2721_v4  ;;  %v2179_v11 = vld [vmem:[%s3046_s21 + $0x98] sm:$0xf]  ;;  %v2180_v12 = vld [vmem:[%s3046_s21 + $0x9c] sm:$0x1]  ;;  %609 = vst [vmem:[#allocation2 + $0x18] sm:$0xf] %v2193_v17 }
  0x4e   : > { %v484_v16 = vshrl.u32 %v2179_v11, 16  ;;  %v487_v18 = vshll.u32 %v2179_v11, 16  ;;  %v493_v19 = vshll.u32 %v2180_v12, 16  ;;  %v2713_v22 = vld [vmem:[#allocation2 + $0xe4] ss:$36 sps:$4 sm:$0xff]   ;;  %v472_v24 = vrot.slane %v470_v13, 4 }
  0x4f   : > { %2459 = vmatpush3.bf16.msra.mxu0 %v2722_v5  ;;  %610 = vst [vmem:[#allocation2 + $0x3c] sm:$0xf] %v2194_v20  ;;  %v475_v25 = vrot.slane %v473_v14, 5  ;;  %v2201_v28 = vld [vmem:[%s3046_s21 + $0x50] sm:$0xf]  ;;  %1702 = vmatprep.mubr.bf16.mxu1 %v2713_v22  ;;  %v481_v29 = vrot.slane %v479_v15, 5 }
  0x50   : > { %2499 = vmatpush3.bf16.msra.mxu1 %v2723_v6  ;;  %v486_v26 = vrot.slane %v484_v16, 4  ;;  %v489_v27 = vrot.slane %v487_v18, 5  ;;  %2536 = vmatprep.subr.bf16.mxu0 %v3220_v21  ;;  %v495_v30 = vrot.slane %v493_v19, 5  ;;  %v2202_v31 = vld [vmem:[%s3046_s21 + $0x58] sm:$0xf]  ;;  %v3254_v8 = vld [vmem:[%s3465_s1 + $0x210] sm:$0xff]  }
  0x51   : > { %2560 = vmatprep.subr.bf16.mxu1 %v3220_v21  ;;  %629 = vst [vmem:[#allocation2 + $0x1c] sm:$0xf] %v2201_v28  ;;  %v476_v32 = vor.u32 %v475_v25, %v472_v24  ;;  %630 = vst [vmem:[#allocation2 + $0x40] sm:$0xf] %v2202_v31  ;;  %v2171_v34 = vld [vmem:[%s3046_s21 + $0xe8] sm:$0xf] }
  0x52   : > { %v490_v33 = vor.u32 %v489_v27, %v486_v26  ;;  %v2172_v35 = vld [vmem:[%s3046_s21 + $0xf0] sm:$0xf]  ;;  %v2181_v36 = vld [vmem:[%s3046_s21 + $0xa0] sm:$0xf]  ;;  %447 = vst [vmem:[#allocation2 + $0x58] sm:$0xf] %v2171_v34 }
  0x53   : > { %v2715_v23 = vld [vmem:[#allocation2 + $0xe0] ss:$36 sps:$4 sm:$0xff]   ;;  %v477_v37 = vrot.slane %v476_v32, 4  ;;  %448 = vst [vmem:[#allocation2 + $0x7c] sm:$0xf] %v2172_v35  ;;  %v498_v42 = vshrl.u32 %v2181_v36, 16 }
  0x54   : > { %1703 = vmatmul.mubr.bf16.gmra.mrb[12].mxu1 %v2715_v23  ;;  %v491_v38 = vrot.slane %v490_v33, 4  ;;  %v2182_v39 = vld [vmem:[%s3046_s21 + $0xa4] sm:$0x1]  ;;  %v2183_v40 = vld [vmem:[%s3046_s21 + $0xa8] sm:$0xf]  ;;  %v501_v43 = vshll.u32 %v2181_v36, 16 }
  0x55   : > { %v2184_v41 = vld [vmem:[%s3046_s21 + $0xac] sm:$0x1]  ;;  %v507_v44 = vshll.u32 %v2182_v39, 16  ;;  %v512_v45 = vshrl.u32 %v2183_v40, 16  ;;  %v482_v46 = vsel %vm3069_vm2, %v477_v37, %v481_v29  ;;  %v515_v48 = vshll.u32 %v2183_v40, 16  ;;  %v3266_v24 = vld [vmem:[%s3465_s1 + $0x218] sm:$0xff]  }
  0x56   : > { %v496_v47 = vsel %vm3069_vm2, %v491_v38, %v495_v30  ;;  %v521_v49 = vshll.u32 %v2184_v41, 16  ;;  %v2195_v50 = vld [vmem:[%s3046_s21 + $0x18] sm:$0xf]  ;;  %v2196_v51 = vld [vmem:[%s3046_s21 + $0x20] sm:$0xf]  ;;  %v500_v53 = vrot.slane %v498_v42, 4 }
  0x57   : > { %589 = vst [vmem:[#allocation2 + $0x14] sm:$0xf] %v482_v46  ;;  %590 = vst [vmem:[#allocation2 + $0x38] sm:$0xf] %v496_v47  ;;  %v503_v54 = vrot.slane %v501_v43, 5  ;;  %v514_v55 = vrot.slane %v512_v45, 4 }
  0x58   : > { %611 = vst [vmem:[#allocation2 + $0x60] sm:$0xf] %v2195_v50  ;;  %612 = vst [vmem:[#allocation2 + $0x84] sm:$0xf] %v2196_v51  ;;  %v2203_v56 = vld [vmem:[%s3046_s21 + $0x60] sm:$0xf] }
  0x59   : > { %v509_v58 = vrot.slane %v507_v44, 5  ;;  %v517_v59 = vrot.slane %v515_v48, 5  ;;  %v2204_v60 = vld [vmem:[%s3046_s21 + $0x68] sm:$0xf]  ;;  %631 = vst [vmem:[#allocation2 + $0x64] sm:$0xf] %v2203_v56  ;;  %v504_v63 = vor.u32 %v503_v54, %v500_v53 }
  0x5a   : > { %v2727_v61 = vld [vmem:[#allocation2 + $0x18] ss:$36 sps:$4 sm:$0xff]   ;;  %v523_v0 = vrot.slane %v521_v49, 5  ;;  %632 = vst [vmem:[#allocation2 + $0x88] sm:$0xf] %v2204_v60  ;;  %v3279_v39 = vld [vmem:[%s3465_s1 + $0x220] sm:$0xff]  }
  0x5b   : > { %v2729_v62 = vld [vmem:[#allocation2 + $0x1c] ss:$36 sps:$4 sm:$0xff]   ;;  %v518_v1 = vor.u32 %v517_v59, %v514_v55  ;;  %v505_v2 = vrot.slane %v504_v63, 4  ;;  %v2173_v3 = vld [vmem:[%s3046_s21 + $0xf8] sm:$0xf]  ;;  %v3301_v60 = vld [vmem:[%s3465_s1 + $0x228] sm:$0xff]  }
  0x5c   : > { %1808 = vmatprep.mubr.bf16.mxu1 %v2729_v62  ;;  %v2174_v5 = vld [vmem:[%s3046_s21 + $0x100] sm:$0xf]  ;;  %449 = vst [vmem:[#allocation2 + $0xa0] sm:$0xf] %v2173_v3  ;;  %v2185_v6 = vld [vmem:[%s3046_s21 + $0xb0] sm:$0xf] }
  0x5d   : > { %1809 = vmatmul.mubr.bf16.vlgmr.msra.gmra.mrb[16].mxu1 %v2727_v61  ;;  %v519_v4 = vrot.slane %v518_v1, 4  ;;  %v510_v7 = vsel %vm3069_vm2, %v505_v2, %v509_v58  ;;  %450 = vst [vmem:[#allocation2 + $0xc4] sm:$0xf] %v2174_v5  ;;  %v2186_v9 = vld [vmem:[%s3046_s21 + $0xb4] sm:$0x1]  ;;  %v526_v14 = vshrl.u32 %v2185_v6, 16 }
  0x5e   : > { %2568 = vmatpush3.bf16.msra.mxu1 %v3220_v21  ;;  %v2187_v10 = vld [vmem:[%s3046_s21 + $0xb8] sm:$0xf]  ;;  %v2188_v11 = vld [vmem:[%s3046_s21 + $0xbc] sm:$0x1]  ;;  %v2724_v12 = vld [vmem:[#allocation2 + $0x10] ss:$36 sps:$4 sm:$0xff]  }
  0x5f   : > { %2561 = vmatprep.subr.bf16.mxu1 %v3242_v57  ;;  %v524_v13 = vsel %vm3069_vm2, %v519_v4, %v523_v0  ;;  %591 = vst [vmem:[#allocation2 + $0x5c] sm:$0xf] %v510_v7  ;;  %v529_v15 = vshll.u32 %v2185_v6, 16  ;;  %v2726_v16 = vld [vmem:[#allocation2 + $0x14] ss:$36 sps:$4 sm:$0xff]   ;;  %v535_v17 = vshll.u32 %v2186_v9, 16 }
  0x60   : > { %592 = vst [vmem:[#allocation2 + $0x80] sm:$0xf] %v524_v13  ;;  %v540_v18 = vshrl.u32 %v2187_v10, 16  ;;  %v543_v19 = vshll.u32 %v2187_v10, 16  ;;  %v2736_v22 = vld [vmem:[#allocation2 + $0x60] ss:$36 sps:$4 sm:$0xff]   ;;  %1743 = vmatprep.mubr.bf16.mxu0 %v2726_v16 }
  0x61   : > { %v2734_v20 = vld [vmem:[#allocation2 + $0x64] ss:$36 sps:$4 sm:$0xff]   ;;  %v528_v23 = vrot.slane %v526_v14, 4  ;;  %v531_v25 = vrot.slane %v529_v15, 5  ;;  %1744 = vmatmul.mubr.bf16.vlgmr.msra.gmra.mrb[16].mxu0 %v2724_v12  ;;  %v537_v29 = vrot.slane %v535_v17, 5  ;;  %v549_v30 = vshll.u32 %v2188_v11, 16 }
  0x62   : > { %2569 = vmatpush3.bf16.msra.mxu1 %v3242_v57  ;;  %v542_v26 = vrot.slane %v540_v18, 4  ;;  %v545_v27 = vrot.slane %v543_v19, 5  ;;  %v2197_v28 = vld [vmem:[%s3046_s21 + $0x28] sm:$0xf]  ;;  %1816 = vmatprep.mubr.bf16.mxu1 %v2734_v20  ;;  %v2198_v31 = vld [vmem:[%s3046_s21 + $0x30] sm:$0xf] }
  0x63   : > { %613 = vst [vmem:[#allocation2 + $0xa8] sm:$0xf] %v2197_v28  ;;  %v2205_v32 = vld [vmem:[%s3046_s21 + $0x70] sm:$0xf]  ;;  %2537 = vmatpush3.bf16.msra.mxu0 %v3220_v21  ;;  %2562 = vmatprep.subr.bf16.mxu1 %v3254_v8  ;;  %v532_v33 = vor.u32 %v531_v25, %v528_v23  ;;  %614 = vst [vmem:[#allocation2 + $0xcc] sm:$0xf] %v2198_v31 }
  0x64   : > { %v546_v34 = vor.u32 %v545_v27, %v542_v26  ;;  %v2206_v35 = vld [vmem:[%s3046_s21 + $0x78] sm:$0xf]  ;;  %633 = vst [vmem:[#allocation2 + $0xac] sm:$0xf] %v2205_v32  ;;  %2538 = vmatprep.subr.bf16.mxu0 %v3242_v57  ;;  %v551_v36 = vrot.slane %v549_v30, 5  ;;  %v3312_v10 = vld [vmem:[%s3465_s1 + $0x230] sm:$0xff]  }
  0x65   : > { %1817 = vmatmul.mubr.bf16.gmra.mrb[20].mxu1 %v2736_v22  ;;  %634 = vst [vmem:[#allocation2 + $0xd0] sm:$0xf] %v2206_v35  ;;  %v533_v21 = vrot.slane %v532_v33, 4  ;;  %v2175_v40 = vld [vmem:[%s3046_s21 + $0x108] sm:$0xf] }
  0x66   : > { %v793_v37 = vld [vmem:[#allocation2 + $0x58] sm:$0xff]  ;;  %2570 = vmatpush3.bf16.msra.mxu1 %v3254_v8  ;;  %v547_v38 = vrot.slane %v546_v34, 4  ;;  %v2176_v43 = vld [vmem:[%s3046_s21 + $0x110] sm:$0xf]  ;;  %451 = vst [vmem:[#allocation2 + $0xe8] sm:$0xf] %v2175_v40 }
  0x67   : > { %v798_v41 = vld [vmem:[#allocation2 + $0x7c] sm:$0xff]  ;;  %2563 = vmatprep.subr.bf16.mxu1 %v3266_v24  ;;  %2539 = vmatpush3.bf16.msra.mxu0 %v3242_v57  ;;  %v538_v45 = vsel %vm3069_vm2, %v533_v21, %v537_v29  ;;  %452 = vst [vmem:[#allocation2 + $0x10c] sm:$0xf] %v2176_v43  ;;  %v2190_v48 = vld [vmem:[%s3046_s21 + $0xc4] sm:$0x1] }
  0x68   : > { %v2732_v42 = vld [vmem:[#allocation2 + $0x5c] ss:$36 sps:$4 sm:$0xff]   ;;  %v2238_v44 = vcombine.low %v793_v37, %v798_v41  ;;  %v552_v46 = vsel %vm3069_vm2, %v547_v38, %v551_v36  ;;  %v2191_v49 = vld [vmem:[%s3046_s21 + $0xc8] sm:$0xf]  ;;  %2540 = vmatprep.subr.bf16.mxu0 %v3254_v8  ;;  %593 = vst [vmem:[#allocation2 + $0xa4] sm:$0xf] %v538_v45 }
  0x69   : > { %v2189_v47 = vld [vmem:[%s3046_s21 + $0xc0] sm:$0xf]  ;;  %1751 = vmatprep.mubr.bf16.mxu0 %v2732_v42  ;;  %594 = vst [vmem:[#allocation2 + $0xc8] sm:$0xf] %v552_v46  ;;  %v2192_v50 = vld [vmem:[%s3046_s21 + $0xcc] sm:$0x1] }
  0x6a   : > { %v554_v51 = vshrl.u32 %v2189_v47, 16  ;;  %v557_v53 = vshll.u32 %v2189_v47, 16  ;;  %v563_v54 = vshll.u32 %v2190_v48, 16  ;;  %v568_v55 = vshrl.u32 %v2191_v49, 16  ;;  %2571 = vmatpush3.bf16.msra.mxu1 %v3266_v24  ;;  %v2199_v58 = vld [vmem:[%s3046_s21 + $0x38] sm:$0xf]  ;;  %1752 = vmatmul.mubr.bf16.gmra.mrb[20].mxu0 %v2238_v44 }
  0x6b   : > { %v571_v56 = vshll.u32 %v2191_v49, 16  ;;  %v577_v57 = vshll.u32 %v2192_v50, 16  ;;  %v2200_v59 = vld [vmem:[%s3046_s21 + $0x40] sm:$0xf]  ;;  %2564 = vmatprep.subr.bf16.mxu1 %v3279_v39  ;;  %615 = vst [vmem:[#allocation2 + $0xf0] sm:$0xf] %v2199_v58  ;;  %2541 = vmatpush3.bf16.msra.mxu0 %v3254_v8 }
  0x6c   : > { %v556_v61 = vrot.slane %v554_v51, 4  ;;  %v559_v62 = vrot.slane %v557_v53, 5  ;;  %v570_v63 = vrot.slane %v568_v55, 4  ;;  %616 = vst [vmem:[#allocation2 + $0x114] sm:$0xf] %v2200_v59  ;;  %2542 = vmatprep.subr.bf16.mxu0 %v3266_v24  ;;  %v565_v4 = vrot.slane %v563_v54, 5 }
  0x6d   : > { %v2741_v0 = vld [vmem:[#allocation2 + $0xac] ss:$36 sps:$4 sm:$0xff]   ;;  %v573_v2 = vrot.slane %v571_v56, 5  ;;  %v579_v5 = vrot.slane %v577_v57, 5  ;;  %v2207_v6 = vld [vmem:[%s3046_s21 + $0x80] sm:$0xf] }
  0x6e   : > { %v2743_v1 = vld [vmem:[#allocation2 + $0xa8] ss:$36 sps:$4 sm:$0xff]   ;;  %v560_v3 = vor.u32 %v559_v62, %v556_v61  ;;  %1824 = vmatprep.mubr.bf16.mxu1 %v2741_v0  ;;  %2572 = vmatpush3.bf16.msra.mxu1 %v3279_v39  ;;  %635 = vst [vmem:[#allocation2 + $0xf4] sm:$0xf] %v2207_v6  ;;  %v2211_v20 = vld [vmem:[%s3046_s21 + $0x10] sm:$0xf] }
  0x6f   : > { %v2208_v7 = vld [vmem:[%s3046_s21 + $0x88] sm:$0xf]  ;;  %v574_v9 = vor.u32 %v573_v2, %v570_v63  ;;  %1825 = vmatmul.mubr.bf16.gmra.mrb[24].mxu1 %v2743_v1  ;;  %2565 = vmatprep.subr.bf16.mxu1 %v3301_v60  ;;  %v803_v12 = vld [vmem:[#allocation2 + $0xa0] sm:$0xff]  ;;  %v2210_v19 = vld [vmem:[%s3046_s21 + $0xc] sm:$0x1]  ;;  %v668_v29 = vshrl.u32 %v2211_v20, 16 }
  0x70   : > { %636 = vst [vmem:[#allocation2 + $0x118] sm:$0xf] %v2208_v7  ;;  %v561_v8 = vrot.slane %v560_v3, 4  ;;  %v2209_v11 = vld [vmem:[%s3046_s21 + $0x8] sm:$0xf]  ;;  %2543 = vmatpush3.bf16.msra.mxu0 %v3266_v24  ;;  %v3328_v24 = vld [vmem:[%s3465_s1 + $0x238] sm:$0xff]  }
  0x71   : > { %v808_v13 = vld [vmem:[#allocation2 + $0xc4] sm:$0xff]  ;;  %v575_v15 = vrot.slane %v574_v9, 4  ;;  %v654_v16 = vshrl.u32 %v2209_v11, 16  ;;  %2544 = vmatprep.subr.bf16.mxu0 %v3279_v39  ;;  %v2212_v22 = vld [vmem:[%s3046_s21 + $0x14] sm:$0x1]  ;;  %v657_v26 = vshll.u32 %v2209_v11, 16 }
  0x72   : > { %v2739_v14 = vld [vmem:[#allocation2 + $0xa4] ss:$36 sps:$4 sm:$0xff]   ;;  %v2247_v17 = vcombine.low %v803_v12, %v808_v13  ;;  %v566_v18 = vsel %vm3069_vm2, %v561_v8, %v565_v4  ;;  %2573 = vmatpush3.bf16.msra.mxu1 %v3301_v60  ;;  %v663_v27 = vshll.u32 %v2210_v19, 16  ;;  %v671_v30 = vshll.u32 %v2211_v20, 16  ;;  %v2218_v32 = vld [vmem:[%s3046_s21 + $0x2c] sm:$0x1] }
  0x73   : > { %1759 = vmatprep.mubr.bf16.mxu0 %v2739_v14  ;;  %v580_v23 = vsel %vm3069_vm2, %v575_v15, %v579_v5  ;;  %595 = vst [vmem:[#allocation2 + $0xec] sm:$0xf] %v566_v18  ;;  %v656_v25 = vrot.slane %v654_v16, 4  ;;  %v2217_v28 = vld [vmem:[%s3046_s21 + $0x28] sm:$0xf]  ;;  %2566 = vmatprep.subr.bf16.mxu1 %v3312_v10  ;;  %v677_v31 = vshll.u32 %v2212_v22, 16 }
  0x74   : > { %1760 = vmatmul.mubr.bf16.gmra.mrb[24].mxu0 %v2247_v17  ;;  %596 = vst [vmem:[#allocation2 + $0x110] sm:$0xf] %v580_v23  ;;  %v710_v33 = vshrl.u32 %v2217_v28, 16  ;;  %v659_v34 = vrot.slane %v657_v26, 5  ;;  %v665_v35 = vrot.slane %v663_v27, 5  ;;  %v670_v38 = vrot.slane %v668_v29, 4 }
  0x75   : > { %2545 = vmatpush3.bf16.msra.mxu0 %v3279_v39  ;;  %v2219_v36 = vld [vmem:[%s3046_s21 + $0x30] sm:$0xf]  ;;  %v2220_v37 = vld [vmem:[%s3046_s21 + $0x34] sm:$0x1]  ;;  %v673_v40 = vrot.slane %v671_v30, 5  ;;  %v679_v43 = vrot.slane %v677_v31, 5 }
  0x76   : > { %2546 = vmatprep.subr.bf16.mxu0 %v3301_v60  ;;  %v2750_v41 = vld [vmem:[#allocation2 + $0xf0] ss:$36 sps:$4 sm:$0xff]   ;;  %2574 = vmatpush3.bf16.msra.mxu1 %v3312_v10  ;;  %v660_v42 = vor.u32 %v659_v34, %v656_v25  ;;  %v712_v44 = vrot.slane %v710_v33, 4  ;;  %v713_v45 = vshll.u32 %v2217_v28, 16  ;;  %v719_v46 = vshll.u32 %v2218_v32, 16 }
  0x77   : > { %v2748_v21 = vld [vmem:[#allocation2 + $0xf4] ss:$36 sps:$4 sm:$0xff]   ;;  %2567 = vmatprep.subr.bf16.mxu1 %v3328_v24  ;;  %v674_v39 = vor.u32 %v673_v40, %v670_v38  ;;  %v724_v47 = vshrl.u32 %v2219_v36, 16  ;;  %v727_v48 = vshll.u32 %v2219_v36, 16  ;;  %v733_v53 = vshll.u32 %v2220_v37, 16 }
  0x78   : > { %1832 = vmatprep.mubr.bf16.mxu1 %v2748_v21  ;;  %v2213_v49 = vld [vmem:[%s3046_s21 + $0x18] sm:$0xf]  ;;  %v661_v50 = vrot.slane %v660_v42, 4  ;;  %v715_v51 = vrot.slane %v713_v45, 5  ;;  %v2214_v54 = vld [vmem:[%s3046_s21 + $0x1c] sm:$0x1] }
  0x79   : > { %2547 = vmatpush3.bf16.msra.mxu0 %v3301_v60  ;;  %1833 = vmatmul.mubr.bf16.gmra.mrb[28].mxu1 %v2750_v41  ;;  %v682_v55 = vshrl.u32 %v2213_v49, 16  ;;  %v675_v57 = vrot.slane %v674_v39, 4  ;;  %v721_v58 = vrot.slane %v719_v46, 5  ;;  %v726_v59 = vrot.slane %v724_v47, 4  ;;  %v2215_v2 = vld [vmem:[%s3046_s21 + $0x20] sm:$0xf] }
  0x7a   : > { %v813_v56 = vld [vmem:[#allocation2 + $0xe8] sm:$0xff]  ;;  %2548 = vmatprep.subr.bf16.mxu0 %v3312_v10  ;;  %v729_v61 = vrot.slane %v727_v48, 5  ;;  %2575 = vmatpush3.bf16.msra.mxu1 %v3328_v24  ;;  %v666_v60 = vsel %vm3069_vm2, %v661_v50, %v665_v35  ;;  %v716_v0 = vor.u32 %v715_v51, %v712_v44  ;;  %v735_v1 = vrot.slane %v733_v53, 5  ;;  %v2216_v6 = vld [vmem:[%s3046_s21 + $0x24] sm:$0x1] }
  0x7b   : > { %v818_v62 = vld [vmem:[#allocation2 + $0x10c] sm:$0xff]  ;;  %v680_v4 = vsel %vm3069_vm2, %v675_v57, %v679_v43  ;;  %773 = vst [vmem:[#allocation2 + $0x20] sm:$0xf] %v666_v60  ;;  %v684_v7 = vrot.slane %v682_v55, 4  ;;  %v2221_v9 = vld [vmem:[%s3046_s21 + $0x38] sm:$0xf] }
  0x7c   : > { %v2746_v63 = vld [vmem:[#allocation2 + $0xec] ss:$36 sps:$4 sm:$0xff]   ;;  %v2256_v3 = vcombine.low %v813_v56, %v818_v62  ;;  %v730_v5 = vor.u32 %v729_v61, %v726_v59  ;;  %774 = vst [vmem:[#allocation2 + $0x44] sm:$0xf] %v680_v4  ;;  %v717_v8 = vrot.slane %v716_v0, 4  ;;  %v685_v11 = vshll.u32 %v2213_v49, 16 }
  0x7d   : > { %1767 = vmatprep.mubr.bf16.mxu0 %v2746_v63  ;;  %2549 = vmatpush3.bf16.msra.mxu0 %v3312_v10  ;;  %v691_v12 = vshll.u32 %v2214_v54, 16  ;;  %v696_v13 = vshrl.u32 %v2215_v2, 16  ;;  %v2222_v14 = vld [vmem:[%s3046_s21 + $0x3c] sm:$0x1]  ;;  %v699_v16 = vshll.u32 %v2215_v2, 16  ;;  %v705_v17 = vshll.u32 %v2216_v6, 16 }
  0x7e   : > { %1768 = vmatmul.mubr.bf16.gmra.mrb[28].mxu0 %v2256_v3  ;;  %2550 = vmatprep.subr.bf16.mxu0 %v3328_v24  ;;  %v731_v15 = vrot.slane %v730_v5, 4  ;;  %v2223_v18 = vld [vmem:[%s3046_s21 + $0x40] sm:$0xf]  ;;  %v738_v19 = vshrl.u32 %v2221_v9, 16  ;;  %v722_v20 = vsel %vm3069_vm2, %v717_v8, %v721_v58  ;;  %v687_v22 = vrot.slane %v685_v11, 5 }
  0x7f   : > { %v698_v10 = vrot.slane %v696_v13, 4  ;;  %v2224_v23 = vld [vmem:[%s3046_s21 + $0x44] sm:$0x1]  ;;  %777 = vst [vmem:[#allocation2 + $0xb0] sm:$0xf] %v722_v20  ;;  %v693_v26 = vrot.slane %v691_v12, 5 }
  0x80   : > { %v736_v25 = vsel %vm3069_vm2, %v731_v15, %v735_v1  ;;  %v701_v27 = vrot.slane %v699_v16, 5  ;;  %v740_v28 = vrot.slane %v738_v19, 4  ;;  %v688_v29 = vor.u32 %v687_v22, %v684_v7  ;;  %s3370_s21 = sand.u32 1, %s2851_s13  }
  0x81   : > { %2551 = vmatpush3.bf16.msra.mxu0 %v3328_v24  ;;  %778 = vst [vmem:[#allocation2 + $0xd4] sm:$0xf] %v736_v25  ;;  %v741_v30 = vshll.u32 %v2221_v9, 16  ;;  %v747_v31 = vshll.u32 %v2222_v14, 16  ;;  %v752_v32 = vshrl.u32 %v2223_v18, 16  ;;  %v707_v34 = vrot.slane %v705_v17, 5 }
  0x82   : > { %v702_v33 = vor.u32 %v701_v27, %v698_v10  ;;  %v755_v35 = vshll.u32 %v2223_v18, 16  ;;  %v761_v36 = vshll.u32 %v2224_v23, 16  ;;  %v689_v37 = vrot.slane %v688_v29, 4  ;;  %s2150_s27 = sshll.u32 %s3370_s21, 5  ;;  %s1960_s7 = scalar_lea.sflag [#allocation4], %s3370_s21 }
  0x83   : > { %v743_v21 = vrot.slane %v741_v30, 5  ;;  %v754_v38 = vrot.slane %v752_v32, 4  ;;  %v2753_v40 = vld [vmem:[#allocation2 + $0x20] ss:$36 sps:$4 sm:$0xff]   ;;  %v749_v24 = vrot.slane %v747_v31, 5  ;;  %s207_s28 = scalar_lea.vmem [#allocation3], %s2150_s27 }
  0x84   : > { %v703_v41 = vrot.slane %v702_v33, 4  ;;  %v757_v42 = vrot.slane %v755_v35, 5  ;;  %v694_v43 = vsel %vm3069_vm2, %v689_v37, %v693_v26  ;;  %2552 = vmatprep.mubr.bf16.mxu0 %v2753_v40  ;;  %v763_v46 = vrot.slane %v761_v36, 5  ;;  %s1981_s29 = sshll.u32 %s207_s28, 4  ;;  %s3382_s29 = int_to_ptr.vmem [resolvable:$true] %s1981_s29 }
  0x85   : > { %v744_v44 = vor.u32 %v743_v21, %v740_v28  ;;  %775 = vst [vmem:[#allocation2 + $0x68] sm:$0xf] %v694_v43  ;;  %s2757_s8 = scalar_lea.vmem %s3382_s29, 512  ;;  %p2764_p1 = scmp.lt.s32.totalorder %s3382_s29, %s2762_s10 }
  0x86   : > { %v708_v45 = vsel %vm3069_vm2, %v703_v41, %v707_v34  ;;  %v758_v39 = vor.u32 %v757_v42, %v754_v38  ;;  %p2758_p12 = scmp.ne.s32.totalorder %s3382_s29, %s2757_s8  ;;  %p2765_p2 = scmp.lt.s32.totalorder %s2763_s18, %s2757_s8 }
  0x87   : > { %776 = vst [vmem:[#allocation2 + $0x8c] sm:$0xf] %v708_v45  ;;  %v745_v47 = vrot.slane %v744_v44, 4 }
  0x88   : > { %v2754_v48 = vld [vmem:[#allocation2 + $0xb0] ss:$36 sps:$4 sm:$0xff]   ;;  %v759_v49 = vrot.slane %v758_v39, 4  ;;  %p2759_p13 = pnand %p2758_p12, %p2933_p4  ;;  %p2766_p3 = por %p2765_p2, %p2764_p1 }
  0x89   : > { %v750_v50 = vsel %vm3069_vm2, %v745_v47, %v749_v24  ;;  %2556 = vmatprep.mubr.bf16.mxu1 %v2754_v48 }
  0x8a   : > { %v764_v51 = vsel %vm3069_vm2, %v759_v49, %v763_v46  ;;  %779 = vst [vmem:[#allocation2 + $0xf8] sm:$0xf] %v750_v50  ;;  %p2760_p0 = pneg %p2759_p13 }
  0x8b   : > { %780 = vst [vmem:[#allocation2 + $0x11c] sm:$0xf] %v764_v51 }
  0x8c   : > { %p2767_p5 = pnand %p2766_p3, %p2760_p0 }
  0x8e   : > { %v2755_v53 = vld [vmem:[#allocation2 + $0x68] ss:$36 sps:$4 sm:$0xff]  }
  0x8f   : > { %2553 = vmatmul.mubr.bf16.vlgmr.msra.gmra.mrb[32].mxu0 %v2755_v53 }
  0x92   : > { %v2756_v54 = vld [vmem:[#allocation2 + $0xf8] ss:$36 sps:$4 sm:$0xff]  }
  0x93   : > { %2557 = vmatmul.mubr.bf16.vlgmr.msra.gmra.mrb[32].mxu1 %v2756_v54 }
 0x105   : > { %v2380_v55 = vpop.f32.mrb[0].mxu0 }
 0x106   : > { %v2381_v56 = vpop.f32.mrb[1].mxu0  ;;  %v2420_v62 = vpop.f32.mrb[0].mxu1 }
 0x107   : > { %v2382_v57 = vadd.f32 %v2381_v56, %v2380_v55  ;;  %v2383_v58 = vpop.f32.mrb[2].mxu0  ;;  %v2421_v63 = vpop.f32.mrb[1].mxu1 }
 0x108   : > { %v2384_v59 = vpop.f32.mrb[3].mxu0  ;;  %v2422_v60 = vadd.f32 %v2421_v63, %v2420_v62  ;;  %v2423_v0 = vpop.f32.mrb[2].mxu1 }
 0x109   : > { %v2385_v61 = vadd.f32 %v2384_v59, %v2383_v58  ;;  %v2424_v1 = vpop.f32.mrb[3].mxu1 }
 0x10a   : > { %v1681_v52 = vadd.f32 %v2422_v60, %v2382_v57  ;;  %v2425_v3 = vadd.f32 %v2424_v1, %v2423_v0 }
 0x10c   : > { %v1684_v7 = vadd.f32 %v2425_v3, %v2385_v61 }
 0x10d   : > { %v2386_v2 = vpop.f32.mrb[4].mxu0 }
 0x10e   : > { %v2387_v4 = vpop.f32.mrb[5].mxu0 }
 0x10f   : > { %v2388_v5 = vadd.f32 %v2387_v4, %v2386_v2  ;;  %v2389_v6 = vpop.f32.mrb[6].mxu0 }
 0x110   : > { %v2390_v9 = vpop.f32.mrb[7].mxu0  ;;  %v2426_v11 = vpop.f32.mrb[4].mxu1 }
 0x111   : > { %v2391_v8 = vadd.f32 %v2390_v9, %v2389_v6  ;;  %v2427_v12 = vpop.f32.mrb[5].mxu1 }
 0x112   : > { %v2428_v13 = vadd.f32 %v2427_v12, %v2426_v11  ;;  %v2429_v14 = vpop.f32.mrb[6].mxu1 }
 0x113   : > { %v2430_v15 = vpop.f32.mrb[7].mxu1 }
 0x114   : > { %v1689_v16 = vadd.f32 %v2428_v13, %v2388_v5  ;;  %v2431_v17 = vadd.f32 %v2430_v15, %v2429_v14 }
 0x115   : > { %v2392_v18 = vpop.f32.mrb[8].mxu0 }
 0x116   : > { %v2393_v19 = vpop.f32.mrb[9].mxu0  ;;  %v1692_v20 = vadd.f32 %v2431_v17, %v2391_v8 }
 0x117   : > { %v2394_v22 = vadd.f32 %v2393_v19, %v2392_v18  ;;  %v2395_v10 = vpop.f32.mrb[10].mxu0 }
 0x118   : > { %v2396_v23 = vpop.f32.mrb[11].mxu0 }
 0x119   : > { %v2397_v25 = vadd.f32 %v2396_v23, %v2395_v10 }
 0x11c   : > { %v2432_v26 = vpop.f32.mrb[8].mxu1 }
 0x11d   : > { %v2433_v27 = vpop.f32.mrb[9].mxu1 }
 0x11e   : > { %v2434_v28 = vadd.f32 %v2433_v27, %v2432_v26  ;;  %v2435_v29 = vpop.f32.mrb[10].mxu1 }
 0x11f   : > { %v2436_v30 = vpop.f32.mrb[11].mxu1  ;;  %v2398_v33 = vpop.f32.mrb[12].mxu0 }
 0x120   : > { %v1697_v31 = vadd.f32 %v2434_v28, %v2394_v22  ;;  %v2437_v32 = vadd.f32 %v2436_v30, %v2435_v29  ;;  %v2399_v34 = vpop.f32.mrb[13].mxu0 }
 0x121   : > { %v2400_v36 = vadd.f32 %v2399_v34, %v2398_v33  ;;  %v2401_v37 = vpop.f32.mrb[14].mxu0 }
 0x122   : > { %v1700_v35 = vadd.f32 %v2437_v32, %v2397_v25  ;;  %v2402_v21 = vpop.f32.mrb[15].mxu0 }
 0x123   : > { %v2403_v38 = vadd.f32 %v2402_v21, %v2401_v37 }
 0x127   : > { %v2438_v40 = vpop.f32.mrb[12].mxu1 }
 0x128   : > { %v2439_v41 = vpop.f32.mrb[13].mxu1 }
 0x129   : > { %v2440_v42 = vadd.f32 %v2439_v41, %v2438_v40  ;;  %v2441_v43 = vpop.f32.mrb[14].mxu1 }
 0x12a   : > { %v2442_v44 = vpop.f32.mrb[15].mxu1 }
 0x12b   : > { %v1705_v24 = vadd.f32 %v2440_v42, %v2400_v36  ;;  %v2443_v45 = vadd.f32 %v2442_v44, %v2441_v43 }
 0x12d   : > { %v1708_v39 = vadd.f32 %v2443_v45, %v2403_v38 }
 0x130   : > { %v2500_v46 = vpop.f32.mrb[16].mxu1 }
 0x131   : > { %v2501_v47 = vpop.f32.mrb[17].mxu1 }
 0x132   : > { %v2502_v48 = vadd.f32 %v2501_v47, %v2500_v46  ;;  %v2503_v49 = vpop.f32.mrb[18].mxu1 }
 0x133   : > { %v2504_v50 = vpop.f32.mrb[19].mxu1 }
 0x134   : > { %v2505_v51 = vadd.f32 %v2504_v50, %v2503_v49  ;;  %v2460_v53 = vpop.f32.mrb[16].mxu0 }
 0x135   : > { %v2461_v54 = vpop.f32.mrb[17].mxu0 }
 0x136   : > { %v2462_v55 = vadd.f32 %v2461_v54, %v2460_v53  ;;  %v2463_v56 = vpop.f32.mrb[18].mxu0 }
 0x137   : > { %v2464_v58 = vpop.f32.mrb[19].mxu0 }
 0x138   : > { %v2506_v57 = vpop.f32.mrb[20].mxu1  ;;  %v1746_v61 = vadd.f32 %v2462_v55, %v1681_v52  ;;  %v2465_v62 = vadd.f32 %v2464_v58, %v2463_v56 }
 0x139   : > { %v2507_v59 = vpop.f32.mrb[21].mxu1 }
 0x13a   : > { %v2508_v63 = vadd.f32 %v2507_v59, %v2506_v57  ;;  %v2509_v60 = vpop.f32.mrb[22].mxu1  ;;  %v1749_v1 = vadd.f32 %v2465_v62, %v1684_v7  ;;  %v1811_v3 = vadd.f32 %v2502_v48, %v1746_v61 }
 0x13b   : > { %v2510_v0 = vpop.f32.mrb[23].mxu1 }
 0x13c   : > { %v2511_v2 = vadd.f32 %v2510_v0, %v2509_v60  ;;  %v1814_v5 = vadd.f32 %v2505_v51, %v1749_v1 }
 0x13d   : > { %v2466_v4 = vpop.f32.mrb[20].mxu0 }
 0x13e   : > { %v2467_v6 = vpop.f32.mrb[21].mxu0 }
 0x13f   : > { %v2468_v9 = vadd.f32 %v2467_v6, %v2466_v4  ;;  %v2469_v8 = vpop.f32.mrb[22].mxu0 }
 0x140   : > { %v2470_v11 = vpop.f32.mrb[23].mxu0 }
 0x141   : > { %v1754_v12 = vadd.f32 %v2468_v9, %v1689_v16  ;;  %v2471_v13 = vadd.f32 %v2470_v11, %v2469_v8 }
 0x142   : > { %v2512_v14 = vpop.f32.mrb[24].mxu1 }
 0x143   : > { %v2513_v15 = vpop.f32.mrb[25].mxu1  ;;  %v1757_v17 = vadd.f32 %v2471_v13, %v1692_v20  ;;  %v1819_v19 = vadd.f32 %v2508_v63, %v1754_v12 }
 0x144   : > { %v2514_v18 = vadd.f32 %v2513_v15, %v2512_v14  ;;  %v2515_v52 = vpop.f32.mrb[26].mxu1 }
 0x145   : > { %v2516_v22 = vpop.f32.mrb[27].mxu1  ;;  %v1822_v7 = vadd.f32 %v2511_v2, %v1757_v17 }
 0x146   : > { %v2517_v23 = vadd.f32 %v2516_v22, %v2515_v52 }
 0x147   : > { %v2472_v10 = vpop.f32.mrb[24].mxu0 }
 0x148   : > { %v2473_v25 = vpop.f32.mrb[25].mxu0 }
 0x149   : > { %v2474_v26 = vadd.f32 %v2473_v25, %v2472_v10  ;;  %v2475_v27 = vpop.f32.mrb[26].mxu0 }
 0x14a   : > { %v2476_v28 = vpop.f32.mrb[27].mxu0 }
 0x14b   : > { %v1762_v29 = vadd.f32 %v2474_v26, %v1697_v31  ;;  %v2477_v30 = vadd.f32 %v2476_v28, %v2475_v27 }
 0x14c   : > { %v2518_v32 = vpop.f32.mrb[28].mxu1 }
 0x14d   : > { %v1765_v33 = vadd.f32 %v2477_v30, %v1700_v35  ;;  %v2519_v16 = vpop.f32.mrb[29].mxu1  ;;  %v1827_v34 = vadd.f32 %v2514_v18, %v1762_v29 }
 0x14e   : > { %v2520_v36 = vadd.f32 %v2519_v16, %v2518_v32  ;;  %v2521_v20 = vpop.f32.mrb[30].mxu1 }
 0x14f   : > { %v2522_v37 = vpop.f32.mrb[31].mxu1  ;;  %v1830_v21 = vadd.f32 %v2517_v23, %v1765_v33 }
 0x150   : > { %v2523_v38 = vadd.f32 %v2522_v37, %v2521_v20 }
 0x151   : > { %v2478_v40 = vpop.f32.mrb[28].mxu0 }
 0x152   : > { %v2479_v41 = vpop.f32.mrb[29].mxu0 }
 0x153   : > { %v2480_v42 = vadd.f32 %v2479_v41, %v2478_v40  ;;  %v2481_v43 = vpop.f32.mrb[30].mxu0 }
 0x154   : > { %v2482_v44 = vpop.f32.mrb[31].mxu0 }
 0x155   : > { %v1770_v45 = vadd.f32 %v2480_v42, %v1705_v24  ;;  %v2483_v46 = vadd.f32 %v2482_v44, %v2481_v43 }
 0x157   : > { %v1773_v47 = vadd.f32 %v2483_v46, %v1708_v39  ;;  %v1835_v31 = vadd.f32 %v2520_v36, %v1770_v45 }
 0x159   : > { %v1838_v48 = vadd.f32 %v2523_v38, %v1773_v47 }
 0x162   : > { %v2554_v35 = vpop.f32.mrb[32].mxu0 }
 0x163   : > { %v1884_v49 = vadd.f32 %v2554_v35, %v1819_v19  ;;  %v1875_v50 = vpop.f32.mrb[33].mxu0 }
 0x164   : > { %v1876_v51 = vadd.f32 %v1875_v50, %v1811_v3  ;;  %v2555_v53 = vpop.f32.mrb[34].mxu0 }
 0x165   : > { %v1887_v54 = vadd.f32 %v2555_v53, %v1822_v7  ;;  %v1878_v55 = vpop.f32.mrb[35].mxu0  ;;  %v1937_v3 = vmul.f32 %v1884_v49, %v1884_v49 }
 0x166   : > { %v2558_v56 = vpop.f32.mrb[32].mxu1  ;;  %v1879_v57 = vadd.f32 %v1878_v55, %v1814_v5  ;;  %v1935_v24 = vmul.f32 %v1876_v51, %v1876_v51 }
 0x167   : > { %v3373_v58 = vadd.f32 %v2558_v56, %v1835_v31  ;;  %v1891_v39 = vpop.f32.mrb[33].mxu1  ;;  %v2349_v59 = vpack.c.bf16 %v1887_v54, %v1884_v49  ;;  %v1938_v8 = vmul.f32 %v1887_v54, %v1887_v54 }
 0x168   : > { %v1892_v61 = vadd.f32 %v1891_v39, %v1827_v34  ;;  %v2559_v62 = vpop.f32.mrb[34].mxu1  ;;  %v2344_v63 = vpack.c.bf16 %v1879_v57, %v1876_v51  ;;  %v1922_v60 = vadd.f32 %v1879_v57, %v1876_v51  ;;  %v1936_v0 = vmul.f32 %v1879_v57, %v1879_v57 }
 0x169   : > { %2361 = vst [vmem:[%s207_s28 + $0x8] sm:$0xff] %v2349_v59   ;;  %v1903_v1 = vadd.f32 %v2559_v62, %v1838_v48  ;;  %v1894_v2 = vpop.f32.mrb[35].mxu1 }
 0x16a   : > { %2345 = vst [vmem:[%s207_s28] sm:$0xff] %v2344_v63   ;;  %v1923_v4 = vadd.f32 %v1922_v60, %v1884_v49  ;;  %v1943_v5 = vadd.f32 %v1936_v0, %v1935_v24  ;;  %v1895_v6 = vadd.f32 %v1894_v2, %v1830_v21  ;;  %v1939_v14 = vmul.f32 %v1892_v61, %v1892_v61 }
 0x16b   : > { %v2359_v9 = vpack.c.bf16 %v1903_v1, %v3373_v58 }
 0x16c   : > { %v1944_v11 = vadd.f32 %v1943_v5, %v1937_v3  ;;  %v2354_v12 = vpack.c.bf16 %v1895_v6, %v1892_v61  ;;  %v1924_v13 = vadd.f32 %v1923_v4, %v1887_v54 }
 0x16d   : > { %2363 = vst [vmem:[%s207_s28 + $0x18] sm:$0xff] %v2359_v9  }
 0x16e   : > { %2362 = vst [vmem:[%s207_s28 + $0x10] sm:$0xff] %v2354_v12   ;;  %v1925_v15 = vadd.f32 %v1924_v13, %v1892_v61  ;;  %v1945_v17 = vadd.f32 %v1944_v11, %v1938_v8 }
 0x16f   : > { %2770 = shalt.err (!%p2767_p5)
}
 0x170   : > { %s2771_s11 = scalar_lea.hbm %s3380_s6, 512  ;;  %s2775_s26 = scalar_lea.hbm %s3466_s2, 1024 }
 0x171   : > { %p2772_p6 = scmp.ne.s32.totalorder %s3380_s6, %s2771_s11  ;;  %p2776_p10 = scmp.lt.u32.totalorder %s3380_s6, %s3466_s2 }
 0x172   : > { %p2777_p11 = scmp.lt.u32.totalorder %s2775_s26, %s2771_s11  ;;  %p2779_p13 = scmp.lt.u32.totalorder %s2771_s11, %s3380_s6 }
 0x173   : > { %p2773_p7 = pnand %p2772_p6, %p2933_p4 }
 0x174   : > { %p2778_p12 = por %p2777_p11, %p2776_p10 }
 0x175   : > { %p2774_p9 = pneg %p2773_p7 }
 0x176   : > { %p2780_p0 = por %p2779_p13, %p2778_p12 }
 0x178   : > { %p2781_p1 = pnand %p2780_p0, %p2774_p9 }
 0x17a   : > { %2784 = shalt.err (!%p2781_p1)
}
 0x17b   : > { %s2870_s30 = smov 64   ;;  %s2871_s4 = smov 4   ;;  %v1926_v18 = vadd.f32 %v1925_v15, %v1895_v6  ;;  %v1940_v52 = vmul.f32 %v1895_v6, %v1895_v6  ;;  %v1946_v19 = vadd.f32 %v1945_v17, %v1939_v14  ;;  %v1941_v22 = vmul.f32 %v3373_v58, %v3373_v58 }
 0x17c   : > { %2577 = dma.vmem_to_hbm [thread:$0]  (%p2933_p4), %s3382_s29, 512, %s3380_s6, %s1960_s7, %s2870_s30, %s2870_s30, %s2871_s4   ;;  %v1942_v7 = vmul.f32 %v1903_v1, %v1903_v1  ;;  %vm1956_vm3 = vcmask 1040384  }
 0x17d   : > { %v1927_v10 = vadd.f32 %v1926_v18, %v3373_v58  ;;  %v1947_v23 = vadd.f32 %v1946_v19, %v1940_v52  ;;  %s2151_s5 = sshll.u32 %s3370_s21, 1  ;;  %s2337_s29 = sshll.u32 %s2859_s15, 5 }
 0x17e   : > { %s214_s6 = scalar_lea.vmem [#allocation5], %s2151_s5  ;;  %s3416_s10 = scalar_lea.hbm %s3467_s3, %s2337_s29 }
 0x17f   : > { %v1928_v25 = vadd.f32 %v1927_v10, %v1903_v1  ;;  %v1948_v26 = vadd.f32 %v1947_v23, %v1941_v22  ;;  %s1999_s7 = sshll.u32 %s214_s6, 4  ;;  %s1965_s18 = scalar_lea.sflag [#allocation6], %s3370_s21  ;;  %s3418_s7 = int_to_ptr.vmem [resolvable:$true] %s1999_s7 }
 0x180   : > { %s2785_s11 = scalar_lea.vmem %s3418_s7, 32  ;;  %s2872_s15 = smov [#allocation5]  }
 0x181   : > { %v1929_v27 = vrot.slane %v1928_v25, 4  ;;  %v1949_v28 = vadd.f32 %v1948_v26, %v1942_v7  ;;  %p2786_p2 = scmp.ne.s32.totalorder %s3418_s7, %s2785_s11  ;;  %s2789_s19 = sshll.u32 %s2872_s15, 4  ;;  %s2790_s19 = int_to_ptr.vmem [resolvable:$false] %s2789_s19 }
 0x182   : > { %s2791_s23 = scalar_lea.vmem %s2790_s19, 64  ;;  %p2792_p6 = scmp.lt.s32.totalorder %s3418_s7, %s2790_s19 }
 0x183   : > { %v1930_v29 = vadd.f32 %v1929_v27, %v1928_v25  ;;  %v1950_v30 = vrot.slane %v1949_v28, 4  ;;  %p2787_p3 = pnand %p2786_p2, %p2933_p4  ;;  %p2793_p7 = scmp.lt.s32.totalorder %s2791_s23, %s2785_s11 }
 0x185   : > { %v1931_v32 = vrot.slane %v1930_v29, 2  ;;  %v1951_v33 = vadd.f32 %v1950_v30, %v1949_v28  ;;  %p2788_p5 = pneg %p2787_p3  ;;  %p2794_p9 = por %p2793_p7, %p2792_p6 }
 0x187   : > { %v1932_v16 = vadd.f32 %v1931_v32, %v1930_v29  ;;  %v1952_v34 = vrot.slane %v1951_v33, 2  ;;  %p2795_p10 = pnand %p2794_p9, %p2788_p5 }
 0x189   : > { %v1933_v36 = vrot.slane %v1932_v16, 1  ;;  %v1953_v20 = vadd.f32 %v1952_v34, %v1951_v33 }
 0x18b   : > { %v1954_v37 = vrot.slane %v1953_v20, 1  ;;  %v1934_v21 = vadd.f32 %v1933_v36, %v1932_v16 }
 0x18d   : > { %v1955_v38 = vadd.f32 %v1954_v37, %v1953_v20 }
 0x18f   : > { %v1957_v40 = vsel %vm1956_vm3, %v1934_v21, %v1955_v38 }
 0x190   : > { %1958 = vst [vmem:[%s214_s6] sm:$0x3] %v1957_v40 }
 0x191   : > { %2798 = shalt.err (!%p2795_p10)
}
 0x192   : > { %s2799_s21 = scalar_lea.hbm %s3416_s10, 32  ;;  %s2803_s28 = scalar_lea.hbm %s3467_s3, 64 }
 0x193   : > { %p2800_p11 = scmp.ne.s32.totalorder %s3416_s10, %s2799_s21  ;;  %p2804_p0 = scmp.lt.u32.totalorder %s3416_s10, %s3467_s3 }
 0x194   : > { %p2805_p1 = scmp.lt.u32.totalorder %s2803_s28, %s2799_s21  ;;  %p2807_p3 = scmp.lt.u32.totalorder %s2799_s21, %s3416_s10 }
 0x195   : > { %p2801_p12 = pnand %p2800_p11, %p2933_p4 }
 0x196   : > { %p2806_p2 = por %p2805_p1, %p2804_p0 }
 0x197   : > { %p2802_p13 = pneg %p2801_p12 }
 0x198   : > { %p2808_p5 = por %p2807_p3, %p2806_p2 }
 0x19a   : > { %p2809_p6 = pnand %p2808_p5, %p2802_p13 }
 0x19c   : > { %2812 = shalt.err (!%p2809_p6)
}
 0x19d   : > { %2578 = dma.vmem_to_hbm [thread:$0]  (%p2933_p4), %s3418_s7, 32, %s3416_s10, %s1965_s18  }
 0x19e PF: > { %p2588_p7 = scmp.ge.s32.totalorder %s2867_s17, 2  ;;  %s2011_s5 = sand.u32 1, %s2847_s12  }
 0x19f   : > { %s2012_s29 = scalar_lea.sflag [#allocation4], %s2011_s5 }
 0x1a0   : > { %p2582_p9 = pnand %p2588_p7, %p2940_p8 }
 0x1a2   : > { %2838 = dma.done.wait (!%p2582_p9), %s2012_s29, 512  }
 0x1a3   : > { %2840 = vsyncadd (!%p2582_p9), %s2012_s29, 4294966784  ;;  %s2021_s6 = scalar_lea.sflag [#allocation6], %s2011_s5 }
 0x1a4   : > { %2842 = dma.done.wait (!%p2582_p9), %s2021_s6, 32  }
 0x1a5   : > { %2844 = vsyncadd (!%p2582_p9), %s2021_s6, 4294967264  ;;  %s20_s17 = sadd.s32 1, %s2867_s17   ;;  %s3472_s12 = smov %s2851_s13 }
 0x1a6   : > { %p17_p10 = scmp.ge.s32.totalorder %s20_s17, 4   ;;  %s3473_s13 = smov %s2855_s14 }
 0x1a7   : > { %s3474_s14 = smov %s2946_s25  ;;  %s3475_s15 = smov %s2863_s16 }
 0x1a8   : > { %s3476_s16 = smov %s3478_s20  ;;  %19 = sbr.rel (!%p17_p10) target bundleno = 6 (0x6), region = 89 }
 0x1af   :  { %2026 = vsyncpa [#allocation4], 1 }
 0x1b0   :  { %2028 = vsyncpa [#allocation4 + $0x1], 1 }
 0x1b1   :  { %2029 = vsyncpa [#allocation6], 1 }
 0x1b2   :  { %2031 = vsyncpa [#allocation6 + $0x1], 1 }

</bundles_post_ra>
